<compile_context>
chip_gen: v7x
topology: tpu7x:2x2x1
jax: 0.10.0
libtpu: 0.0.40
codegen_flags: <defaults>
</compile_context>

<pallas_src>
import jax
import jax.numpy as jnp
from jax.experimental import pallas as pl
from jax.experimental.pallas import tpu as pltpu


def _drrn_block_kernel(x_ref, w1_ref, b1_ref, w2_ref, b2_ref, o_ref,
                       slab1_ref, slab2_ref):
    """One H-tile of: out = x + conv2(relu(conv1(relu(x)))) (3x3 convs, SAME pad).

    x_ref    : (1, H, W, C)   full image, resident across the H-tile grid axis
    w*_ref   : (3, 3C, C)     bf16 weight slabs: [dy] -> concat_dx(w[dy, dx]) over C_in
    b*_ref   : (1, C)         f32 biases
    o_ref    : (1, TH, W, C)  output tile (global rows t*TH .. t*TH+TH-1)
    slab*_ref: ((TH+4)*W, 3C) / ((TH+2)*W, 3C)  bf16 im2col slab scratch
    """
    _, H, W, C = x_ref.shape
    TH = o_ref.shape[1]
    t = pl.program_id(1)
    r0 = t * TH
    if TH % 8 == 0:
        r0 = pl.multiple_of(r0, 8)

    def halo_row(g):
        # relu'd image row g as (1, W, C); zeros if g is outside the image.
        row = x_ref[0, pl.ds(jnp.clip(g, 0, H - 1), 1), :, :]
        keep = jnp.logical_and(g >= 0, g < H).astype(row.dtype)
        return row * keep

    def build_slab(act, dst_ref):
        # act: (P, W, C) bf16  ->  dst_ref[(P*W, 3C)] = [act(w-1) | act(w) | act(w+1)]
        P = act.shape[0]
        zcol = jnp.zeros((P, 1, C), act.dtype)
        left = jnp.concatenate([zcol, act[:, :W - 1, :]], axis=1)   # column w-1 (dx=0)
        right = jnp.concatenate([act[:, 1:, :], zcol], axis=1)      # column w+1 (dx=2)
        slab = jnp.concatenate([left, act, right], axis=-1)         # (P, W, 3C)
        dst_ref[...] = slab.reshape(P * W, 3 * C)

    def conv_slab(slab_ref, w_ref, b_ref, rows_out):
        # out[j*W + w] = sum_dy slab[(j+dy)*W + w] @ w_ref[dy]  (aligned row offsets)
        m = rows_out * W
        acc = jnp.dot(slab_ref[0:m, :], w_ref[0],
                      preferred_element_type=jnp.float32)
        acc = acc + jnp.dot(slab_ref[W:W + m, :], w_ref[1],
                            preferred_element_type=jnp.float32)
        acc = acc + jnp.dot(slab_ref[2 * W:2 * W + m, :], w_ref[2],
                            preferred_element_type=jnp.float32)
        return acc + b_ref[...]                                     # (m, C) f32

    # ---- conv1 over TH+2 rows (global r0-1 .. r0+TH); needs x rows r0-2 .. r0+TH+1.
    body = x_ref[0, pl.ds(r0, TH), :, :]                            # (TH, W, C)
    act1 = jnp.concatenate(
        [halo_row(r0 - 2), halo_row(r0 - 1), body,
         halo_row(r0 + TH), halo_row(r0 + TH + 1)], axis=0)         # (TH+4, W, C)
    act1 = jnp.maximum(act1, 0.0).astype(jnp.bfloat16)              # relu in f32, cast
    build_slab(act1, slab1_ref)
    h = conv_slab(slab1_ref, w1_ref, b1_ref, TH + 2)                # ((TH+2)*W, C) f32

    # ---- conv2 over TH rows; input is relu(h) with out-of-image rows zeroed
    #      (rows r0-1 / r0+TH are zero padding when the tile touches an image edge).
    h3 = jnp.maximum(h, 0.0).reshape(TH + 2, W, C)
    keep_top = (r0 - 1 >= 0).astype(h3.dtype)
    keep_bot = (r0 + TH < H).astype(h3.dtype)
    act2 = jnp.concatenate(
        [h3[0:1] * keep_top, h3[1:TH + 1], h3[TH + 1:TH + 2] * keep_bot],
        axis=0).astype(jnp.bfloat16)                                # (TH+2, W, C)
    build_slab(act2, slab2_ref)
    y = conv_slab(slab2_ref, w2_ref, b2_ref, TH)                    # (TH*W, C) f32

    # ---- residual add; x tile is re-read here so it is not live across both convs.
    o_ref[0] = x_ref[0, pl.ds(r0, TH), :, :] + y.reshape(TH, W, C)


def _pick_tile_h(H):
    """Pick an H tile that divides H; ~8 rows keeps accumulators small."""
    if H <= 8:
        return H
    for th in (8, 16, 4, 2):
        if H % th == 0:
            return th
    return H


def residual_block_drrn(x_nhwc, w1_hwio, b1, w2_hwio, b2, *, tile_h=None):
    """One DRRN residual block. Weights are HWIO (3,3,C,C); biases (C,)."""
    N, H, W, C = x_nhwc.shape
    if tile_h is None:
        tile_h = _pick_tile_h(H)
    assert H % tile_h == 0, (H, tile_h)
    n_tiles = H // tile_h

    # (dy, dx, Cin, Cout) -> (dy, dx*Cin, Cout): one (3C, C) bf16 weight slab per dy.
    w1s = w1_hwio.astype(jnp.bfloat16).reshape(3, 3 * C, C)
    w2s = w2_hwio.astype(jnp.bfloat16).reshape(3, 3 * C, C)
    b1k = b1.reshape(1, C).astype(jnp.float32)
    b2k = b2.reshape(1, C).astype(jnp.float32)

    cost = pl.CostEstimate(
        flops=2 * 2 * 9 * N * H * W * C * C,
        transcendentals=0,
        bytes_accessed=2 * N * H * W * C * 4 + 2 * (9 * C * C + C) * 4)

    return pl.pallas_call(
        _drrn_block_kernel,
        out_shape=jax.ShapeDtypeStruct((N, H, W, C), jnp.float32),
        grid=(N, n_tiles),
        in_specs=[
            pl.BlockSpec((1, H, W, C), lambda n, t: (n, 0, 0, 0)),
            pl.BlockSpec((3, 3 * C, C), lambda n, t: (0, 0, 0)),
            pl.BlockSpec((1, C), lambda n, t: (0, 0)),
            pl.BlockSpec((3, 3 * C, C), lambda n, t: (0, 0, 0)),
            pl.BlockSpec((1, C), lambda n, t: (0, 0)),
        ],
        out_specs=pl.BlockSpec((1, tile_h, W, C), lambda n, t: (n, t, 0, 0)),
        scratch_shapes=[
            pltpu.VMEM(((tile_h + 4) * W, 3 * C), jnp.bfloat16),
            pltpu.VMEM(((tile_h + 2) * W, 3 * C), jnp.bfloat16),
        ],
        compiler_params=pltpu.CompilerParams(
            dimension_semantics=("parallel", "parallel")),
        cost_estimate=cost,
    )(x_nhwc.astype(jnp.float32), w1s, b1k, w2s, b2k)


class Block:
    """JAX/Pallas port of carn.model.drrn_ps.Block (three scale-specific blocks)."""

    def __init__(self, in_channels, out_channels, banklength, matrix=None, *, key):
        assert in_channels == out_channels, "DRRN residual block requires C_in == C_out"
        C = in_channels
        kb, kc, kbias = jax.random.split(key, 3)
        # TODO(synk): ops.ResidualBlock_drrn's exact bank/matrix combination code is
        # not available here; we synthesise each scale's effective 3x3 conv weights as
        # a matrix-weighted sum over a shared weight bank (the drrn_ps sharing scheme).
        bank = (0.05 / 3.0) * jax.random.normal(
            kb, (banklength, 3, 3, C, C), jnp.float32)
        if matrix is None:
            matrix = jax.random.normal(kc, (3, 2, banklength), jnp.float32) / banklength
        biases = 0.01 * jax.random.normal(kbias, (3, 2, C), jnp.float32)

        self.params = {}
        for i, scale in enumerate((2, 3, 4)):
            w1 = jnp.einsum("b,bhwio->hwio", matrix[i, 0], bank)
            w2 = jnp.einsum("b,bhwio->hwio", matrix[i, 1], bank)
            self.params[scale] = (w1, biases[i, 0], w2, biases[i, 1])

    def __call__(self, x_nchw, scale):
        # Mirrors the PyTorch forward's python-level `if scale == ...` dispatch.
        w1, b1, w2, b2 = self.params[scale]
        x_nhwc = jnp.transpose(x_nchw, (0, 2, 3, 1)).astype(jnp.float32)
        out_nhwc = residual_block_drrn(x_nhwc, w1, b1, w2, b2)
        return jnp.transpose(out_nhwc, (0, 3, 1, 2))  # back to NCHW


def _reference_block(x_nchw, w1_hwio, b1, w2_hwio, b2):
    """Pure-JAX reference (lax.conv) for correctness checking."""
    x = jnp.transpose(x_nchw, (0, 2, 3, 1)).astype(jnp.float32)

    def conv(h, w, b):
        y = jax.lax.conv_general_dilated(
            h, w, (1, 1), "SAME",
            dimension_numbers=("NHWC", "HWIO", "NHWC"),
            precision=jax.lax.Precision.HIGHEST)
        return y + b

    h = conv(jax.nn.relu(x), w1_hwio, b1)
    y = conv(jax.nn.relu(h), w2_hwio, b2)
    return jnp.transpose(x + y, (0, 3, 1, 2))


if __name__ == "__main__":
    key = jax.random.PRNGKey(0)
    kx, kp = jax.random.split(key)

    # DRRN uses 128 feature maps; 128 channels == one full TPU lane width, so the
    # kernel's channel matmuls are lane-dense. Spatial/batch kept small.
    N, C, H, W = 2, 128, 16, 16
    banklength = 4

    x = jax.random.normal(kx, (N, C, H, W), jnp.float32)  # NCHW, like PyTorch
    block = Block(C, C, banklength, matrix=None, key=kp)

    for scale in (2, 3, 4):
        out = block(x, scale)
        out = jax.block_until_ready(out)
        assert out.shape == x.shape and out.dtype == jnp.float32
        ref = _reference_block(x, *block.params[scale])
        # bf16 MXU operands (f32 accumulation) => slightly looser tolerance than
        # the f32 HIGHEST-precision lax.conv reference.
        if not bool(jnp.allclose(out, ref, atol=1e-2, rtol=1e-2)):
            raise AssertionError(
                f"scale={scale} max_abs_err={float(jnp.max(jnp.abs(out - ref)))}")

    print("KERNEL_OK")
</pallas_src>

<mosaic_0001>
module attributes {stable_mosaic.version = 11 : i64} {
  func.func @_drrn_block_kernel(%arg0: i32, %arg1: i32, %arg2: memref<1x16x16x128xf32, #tpu.memory_space<vmem>>, %arg3: memref<3x384x128xbf16, #tpu.memory_space<vmem>>, %arg4: memref<1x128xf32, #tpu.memory_space<vmem>>, %arg5: memref<3x384x128xbf16, #tpu.memory_space<vmem>>, %arg6: memref<1x128xf32, #tpu.memory_space<vmem>>, %arg7: memref<1x8x16x128xf32, #tpu.memory_space<vmem>>, %arg8: memref<192x384xbf16, #tpu.memory_space<vmem>>, %arg9: memref<160x384xbf16, #tpu.memory_space<vmem>>) attributes {dimension_semantics = [#tpu.dimension_semantics<parallel>, #tpu.dimension_semantics<parallel>], iteration_bounds = array<i64: 2, 2>, scalar_prefetch = 0 : i64, scratch_operands = 2 : i64, tpu.core_type = #tpu.core_type<tc>, window_params = [{transform_indices = @transform_0, window_bounds = array<i64: 1, 16, 16, 128>}, {pipeline_mode = #tpu.pipeline_mode<synchronous>, transform_indices = @transform_1, window_bounds = array<i64: 3, 384, 128>}, {pipeline_mode = #tpu.pipeline_mode<synchronous>, transform_indices = @transform_2, window_bounds = array<i64: 1, 128>}, {pipeline_mode = #tpu.pipeline_mode<synchronous>, transform_indices = @transform_3, window_bounds = array<i64: 3, 384, 128>}, {pipeline_mode = #tpu.pipeline_mode<synchronous>, transform_indices = @transform_4, window_bounds = array<i64: 1, 128>}, {transform_indices = @transform_5, window_bounds = array<i64: 1, 8, 16, 128>}]} {
    %c8_i32 = arith.constant 8 : i32
    %0 = arith.muli %arg1, %c8_i32 : i32
    %1 = tpu.assume_multiple %0, 8 : i32
    %c0 = arith.constant 0 : index
    %2 = arith.index_cast %1 : i32 to index
    %c0_0 = arith.constant 0 : index
    %c0_1 = arith.constant 0 : index
    %3 = vector.load %arg2[%c0, %2, %c0_0, %c0_1] : memref<1x16x16x128xf32, #tpu.memory_space<vmem>>, vector<1x8x16x128xf32>
    %4 = vector.shape_cast %3 : vector<1x8x16x128xf32> to vector<8x16x128xf32>
    %c2_i32 = arith.constant 2 : i32
    %5 = arith.subi %1, %c2_i32 : i32
    %c0_i32 = arith.constant 0 : i32
    %c15_i32 = arith.constant 15 : i32
    %6 = arith.maxsi %c0_i32, %5 : i32
    %7 = arith.minsi %c15_i32, %6 : i32
    %c0_2 = arith.constant 0 : index
    %8 = arith.index_cast %7 : i32 to index
    %c0_3 = arith.constant 0 : index
    %c0_4 = arith.constant 0 : index
    %9 = vector.load %arg2[%c0_2, %8, %c0_3, %c0_4] : memref<1x16x16x128xf32, #tpu.memory_space<vmem>>, vector<1x1x16x128xf32>
    %10 = vector.shape_cast %9 : vector<1x1x16x128xf32> to vector<1x16x128xf32>
    %c0_i32_5 = arith.constant 0 : i32
    %11 = arith.cmpi sge, %5, %c0_i32_5 : i32
    %c16_i32 = arith.constant 16 : i32
    %12 = arith.cmpi slt, %5, %c16_i32 : i32
    %13 = arith.andi %11, %12 : i1
    %14 = arith.extui %13 : i1 to i32
    %15 = arith.sitofp %14 : i32 to f32
    %16 = vector.broadcast %15 : f32 to vector<1x16x128xf32>
    %17 = arith.mulf %10, %16 : vector<1x16x128xf32>
    %c1_i32 = arith.constant 1 : i32
    %18 = arith.subi %1, %c1_i32 : i32
    %c0_i32_6 = arith.constant 0 : i32
    %c15_i32_7 = arith.constant 15 : i32
    %19 = arith.maxsi %c0_i32_6, %18 : i32
    %20 = arith.minsi %c15_i32_7, %19 : i32
    %c0_8 = arith.constant 0 : index
    %21 = arith.index_cast %20 : i32 to index
    %c0_9 = arith.constant 0 : index
    %c0_10 = arith.constant 0 : index
    %22 = vector.load %arg2[%c0_8, %21, %c0_9, %c0_10] : memref<1x16x16x128xf32, #tpu.memory_space<vmem>>, vector<1x1x16x128xf32>
    %23 = vector.shape_cast %22 : vector<1x1x16x128xf32> to vector<1x16x128xf32>
    %c0_i32_11 = arith.constant 0 : i32
    %24 = arith.cmpi sge, %18, %c0_i32_11 : i32
    %c16_i32_12 = arith.constant 16 : i32
    %25 = arith.cmpi slt, %18, %c16_i32_12 : i32
    %26 = arith.andi %24, %25 : i1
    %27 = arith.extui %26 : i1 to i32
    %28 = arith.sitofp %27 : i32 to f32
    %29 = vector.broadcast %28 : f32 to vector<1x16x128xf32>
    %30 = arith.mulf %23, %29 : vector<1x16x128xf32>
    %c8_i32_13 = arith.constant 8 : i32
    %31 = arith.addi %1, %c8_i32_13 : i32
    %c0_i32_14 = arith.constant 0 : i32
    %c15_i32_15 = arith.constant 15 : i32
    %32 = arith.maxsi %c0_i32_14, %31 : i32
    %33 = arith.minsi %c15_i32_15, %32 : i32
    %c0_16 = arith.constant 0 : index
    %34 = arith.index_cast %33 : i32 to index
    %c0_17 = arith.constant 0 : index
    %c0_18 = arith.constant 0 : index
    %35 = vector.load %arg2[%c0_16, %34, %c0_17, %c0_18] : memref<1x16x16x128xf32, #tpu.memory_space<vmem>>, vector<1x1x16x128xf32>
    %36 = vector.shape_cast %35 : vector<1x1x16x128xf32> to vector<1x16x128xf32>
    %c0_i32_19 = arith.constant 0 : i32
    %37 = arith.cmpi sge, %31, %c0_i32_19 : i32
    %c16_i32_20 = arith.constant 16 : i32
    %38 = arith.cmpi slt, %31, %c16_i32_20 : i32
    %39 = arith.andi %37, %38 : i1
    %40 = arith.extui %39 : i1 to i32
    %41 = arith.sitofp %40 : i32 to f32
    %42 = vector.broadcast %41 : f32 to vector<1x16x128xf32>
    %43 = arith.mulf %36, %42 : vector<1x16x128xf32>
    %c8_i32_21 = arith.constant 8 : i32
    %44 = arith.addi %1, %c8_i32_21 : i32
    %c1_i32_22 = arith.constant 1 : i32
    %45 = arith.addi %44, %c1_i32_22 : i32
    %c0_i32_23 = arith.constant 0 : i32
    %c15_i32_24 = arith.constant 15 : i32
    %46 = arith.maxsi %c0_i32_23, %45 : i32
    %47 = arith.minsi %c15_i32_24, %46 : i32
    %c0_25 = arith.constant 0 : index
    %48 = arith.index_cast %47 : i32 to index
    %c0_26 = arith.constant 0 : index
    %c0_27 = arith.constant 0 : index
    %49 = vector.load %arg2[%c0_25, %48, %c0_26, %c0_27] : memref<1x16x16x128xf32, #tpu.memory_space<vmem>>, vector<1x1x16x128xf32>
    %50 = vector.shape_cast %49 : vector<1x1x16x128xf32> to vector<1x16x128xf32>
    %c0_i32_28 = arith.constant 0 : i32
    %51 = arith.cmpi sge, %45, %c0_i32_28 : i32
    %c16_i32_29 = arith.constant 16 : i32
    %52 = arith.cmpi slt, %45, %c16_i32_29 : i32
    %53 = arith.andi %51, %52 : i1
    %54 = arith.extui %53 : i1 to i32
    %55 = arith.sitofp %54 : i32 to f32
    %56 = vector.broadcast %55 : f32 to vector<1x16x128xf32>
    %57 = arith.mulf %50, %56 : vector<1x16x128xf32>
    %58 = tpu.concatenate %17, %30, %4, %43, %57 in 0 : vector<1x16x128xf32>, vector<1x16x128xf32>, vector<8x16x128xf32>, vector<1x16x128xf32>, vector<1x16x128xf32> -> vector<12x16x128xf32>
    %cst = arith.constant 0.000000e+00 : f32
    %59 = vector.broadcast %cst : f32 to vector<12x16x128xf32>
    %60 = arith.maximumf %58, %59 : vector<12x16x128xf32>
    %61 = arith.truncf %60 : vector<12x16x128xf32> to vector<12x16x128xbf16>
    %cst_30 = arith.constant 0.000000e+00 : bf16
    %62 = vector.broadcast %cst_30 : bf16 to vector<12x1x128xbf16>
    %63 = vector.extract_strided_slice %61 {offsets = [0, 0, 0], sizes = [12, 15, 128], strides = [1, 1, 1]} : vector<12x16x128xbf16> to vector<12x15x128xbf16>
    %64 = tpu.concatenate %62, %63 in 1 : vector<12x1x128xbf16>, vector<12x15x128xbf16> -> vector<12x16x128xbf16>
    %65 = vector.extract_strided_slice %61 {offsets = [0, 1, 0], sizes = [12, 15, 128], strides = [1, 1, 1]} : vector<12x16x128xbf16> to vector<12x15x128xbf16>
    %66 = tpu.concatenate %65, %62 in 1 : vector<12x15x128xbf16>, vector<12x1x128xbf16> -> vector<12x16x128xbf16>
    %67 = tpu.concatenate %64, %61, %66 in 2 : vector<12x16x128xbf16>, vector<12x16x128xbf16>, vector<12x16x128xbf16> -> vector<12x16x384xbf16>
    %68 = vector.shape_cast %67 : vector<12x16x384xbf16> to vector<192x384xbf16>
    %c0_31 = arith.constant 0 : index
    %c0_32 = arith.constant 0 : index
    %69 = vector.load %arg8[%c0_31, %c0_32] : memref<192x384xbf16, #tpu.memory_space<vmem>>, vector<192x384xbf16>
    tpu.vector_store %arg8[%c0_31, %c0_32], %68 {strides = array<i32>} : memref<192x384xbf16, #tpu.memory_space<vmem>>, vector<192x384xbf16>,
    %c0_33 = arith.constant 0 : index
    %c0_34 = arith.constant 0 : index
    %70 = vector.load %arg8[%c0_33, %c0_34] : memref<192x384xbf16, #tpu.memory_space<vmem>>, vector<160x384xbf16>
    %c0_35 = arith.constant 0 : index
    %c0_36 = arith.constant 0 : index
    %c0_37 = arith.constant 0 : index
    %71 = vector.load %arg3[%c0_35, %c0_36, %c0_37] : memref<3x384x128xbf16, #tpu.memory_space<vmem>>, vector<1x384x128xbf16>
    %72 = vector.shape_cast %71 : vector<1x384x128xbf16> to vector<384x128xbf16>
    %cst_38 = arith.constant dense<0.000000e+00> : vector<160x128xf32>
    %73 = tpu.matmul %70, %72, %cst_38 {dimension_numbers = #tpu.dot_dimension_numbers<[1], [0], [0], [1], [0, 0, 1, 1], [], []>} : vector<160x384xbf16>, vector<384x128xbf16>, vector<160x128xf32> -> vector<160x128xf32>
    %c16 = arith.constant 16 : index
    %c0_39 = arith.constant 0 : index
    %74 = vector.load %arg8[%c16, %c0_39] : memref<192x384xbf16, #tpu.memory_space<vmem>>, vector<160x384xbf16>
    %c1 = arith.constant 1 : index
    %c0_40 = arith.constant 0 : index
    %c0_41 = arith.constant 0 : index
    %75 = vector.load %arg3[%c1, %c0_40, %c0_41] : memref<3x384x128xbf16, #tpu.memory_space<vmem>>, vector<1x384x128xbf16>
    %76 = vector.shape_cast %75 : vector<1x384x128xbf16> to vector<384x128xbf16>
    %cst_42 = arith.constant dense<0.000000e+00> : vector<160x128xf32>
    %77 = tpu.matmul %74, %76, %cst_42 {dimension_numbers = #tpu.dot_dimension_numbers<[1], [0], [0], [1], [0, 0, 1, 1], [], []>} : vector<160x384xbf16>, vector<384x128xbf16>, vector<160x128xf32> -> vector<160x128xf32>
    %78 = arith.addf %73, %77 : vector<160x128xf32>
    %c32 = arith.constant 32 : index
    %c0_43 = arith.constant 0 : index
    %79 = vector.load %arg8[%c32, %c0_43] : memref<192x384xbf16, #tpu.memory_space<vmem>>, vector<160x384xbf16>
    %c2 = arith.constant 2 : index
    %c0_44 = arith.constant 0 : index
    %c0_45 = arith.constant 0 : index
    %80 = vector.load %arg3[%c2, %c0_44, %c0_45] : memref<3x384x128xbf16, #tpu.memory_space<vmem>>, vector<1x384x128xbf16>
    %81 = vector.shape_cast %80 : vector<1x384x128xbf16> to vector<384x128xbf16>
    %cst_46 = arith.constant dense<0.000000e+00> : vector<160x128xf32>
    %82 = tpu.matmul %79, %81, %cst_46 {dimension_numbers = #tpu.dot_dimension_numbers<[1], [0], [0], [1], [0, 0, 1, 1], [], []>} : vector<160x384xbf16>, vector<384x128xbf16>, vector<160x128xf32> -> vector<160x128xf32>
    %83 = arith.addf %78, %82 : vector<160x128xf32>
    %c0_47 = arith.constant 0 : index
    %c0_48 = arith.constant 0 : index
    %84 = vector.load %arg4[%c0_47, %c0_48] : memref<1x128xf32, #tpu.memory_space<vmem>>, vector<1x128xf32>
    %85 = vector.broadcast %84 : vector<1x128xf32> to vector<160x128xf32>
    %86 = arith.addf %83, %85 : vector<160x128xf32>
    %cst_49 = arith.constant 0.000000e+00 : f32
    %87 = vector.broadcast %cst_49 : f32 to vector<160x128xf32>
    %88 = arith.maximumf %86, %87 : vector<160x128xf32>
    %89 = vector.shape_cast %88 : vector<160x128xf32> to vector<10x16x128xf32>
    %c1_i32_50 = arith.constant 1 : i32
    %90 = arith.subi %1, %c1_i32_50 : i32
    %c0_i32_51 = arith.constant 0 : i32
    %91 = arith.cmpi sge, %90, %c0_i32_51 : i32
    %92 = arith.extui %91 : i1 to i32
    %93 = arith.sitofp %92 : i32 to f32
    %c8_i32_52 = arith.constant 8 : i32
    %94 = arith.addi %1, %c8_i32_52 : i32
    %c16_i32_53 = arith.constant 16 : i32
    %95 = arith.cmpi slt, %94, %c16_i32_53 : i32
    %96 = arith.extui %95 : i1 to i32
    %97 = arith.sitofp %96 : i32 to f32
    %98 = vector.extract_strided_slice %89 {offsets = [0, 0, 0], sizes = [1, 16, 128], strides = [1, 1, 1]} : vector<10x16x128xf32> to vector<1x16x128xf32>
    %99 = vector.broadcast %93 : f32 to vector<1x16x128xf32>
    %100 = arith.mulf %98, %99 : vector<1x16x128xf32>
    %101 = vector.extract_strided_slice %89 {offsets = [1, 0, 0], sizes = [8, 16, 128], strides = [1, 1, 1]} : vector<10x16x128xf32> to vector<8x16x128xf32>
    %102 = vector.extract_strided_slice %89 {offsets = [9, 0, 0], sizes = [1, 16, 128], strides = [1, 1, 1]} : vector<10x16x128xf32> to vector<1x16x128xf32>
    %103 = vector.broadcast %97 : f32 to vector<1x16x128xf32>
    %104 = arith.mulf %102, %103 : vector<1x16x128xf32>
    %105 = tpu.concatenate %100, %101, %104 in 0 : vector<1x16x128xf32>, vector<8x16x128xf32>, vector<1x16x128xf32> -> vector<10x16x128xf32>
    %106 = arith.truncf %105 : vector<10x16x128xf32> to vector<10x16x128xbf16>
    %cst_54 = arith.constant 0.000000e+00 : bf16
    %107 = vector.broadcast %cst_54 : bf16 to vector<10x1x128xbf16>
    %108 = vector.extract_strided_slice %106 {offsets = [0, 0, 0], sizes = [10, 15, 128], strides = [1, 1, 1]} : vector<10x16x128xbf16> to vector<10x15x128xbf16>
    %109 = tpu.concatenate %107, %108 in 1 : vector<10x1x128xbf16>, vector<10x15x128xbf16> -> vector<10x16x128xbf16>
    %110 = vector.extract_strided_slice %106 {offsets = [0, 1, 0], sizes = [10, 15, 128], strides = [1, 1, 1]} : vector<10x16x128xbf16> to vector<10x15x128xbf16>
    %111 = tpu.concatenate %110, %107 in 1 : vector<10x15x128xbf16>, vector<10x1x128xbf16> -> vector<10x16x128xbf16>
    %112 = tpu.concatenate %109, %106, %111 in 2 : vector<10x16x128xbf16>, vector<10x16x128xbf16>, vector<10x16x128xbf16> -> vector<10x16x384xbf16>
    %113 = vector.shape_cast %112 : vector<10x16x384xbf16> to vector<160x384xbf16>
    %c0_55 = arith.constant 0 : index
    %c0_56 = arith.constant 0 : index
    %114 = vector.load %arg9[%c0_55, %c0_56] : memref<160x384xbf16, #tpu.memory_space<vmem>>, vector<160x384xbf16>
    tpu.vector_store %arg9[%c0_55, %c0_56], %113 {strides = array<i32>} : memref<160x384xbf16, #tpu.memory_space<vmem>>, vector<160x384xbf16>,
    %c0_57 = arith.constant 0 : index
    %c0_58 = arith.constant 0 : index
    %115 = vector.load %arg9[%c0_57, %c0_58] : memref<160x384xbf16, #tpu.memory_space<vmem>>, vector<128x384xbf16>
    %c0_59 = arith.constant 0 : index
    %c0_60 = arith.constant 0 : index
    %c0_61 = arith.constant 0 : index
    %116 = vector.load %arg5[%c0_59, %c0_60, %c0_61] : memref<3x384x128xbf16, #tpu.memory_space<vmem>>, vector<1x384x128xbf16>
    %117 = vector.shape_cast %116 : vector<1x384x128xbf16> to vector<384x128xbf16>
    %cst_62 = arith.constant dense<0.000000e+00> : vector<128x128xf32>
    %118 = tpu.matmul %115, %117, %cst_62 {dimension_numbers = #tpu.dot_dimension_numbers<[1], [0], [0], [1], [0, 0, 1, 1], [], []>} : vector<128x384xbf16>, vector<384x128xbf16>, vector<128x128xf32> -> vector<128x128xf32>
    %c16_63 = arith.constant 16 : index
    %c0_64 = arith.constant 0 : index
    %119 = vector.load %arg9[%c16_63, %c0_64] : memref<160x384xbf16, #tpu.memory_space<vmem>>, vector<128x384xbf16>
    %c1_65 = arith.constant 1 : index
    %c0_66 = arith.constant 0 : index
    %c0_67 = arith.constant 0 : index
    %120 = vector.load %arg5[%c1_65, %c0_66, %c0_67] : memref<3x384x128xbf16, #tpu.memory_space<vmem>>, vector<1x384x128xbf16>
    %121 = vector.shape_cast %120 : vector<1x384x128xbf16> to vector<384x128xbf16>
    %cst_68 = arith.constant dense<0.000000e+00> : vector<128x128xf32>
    %122 = tpu.matmul %119, %121, %cst_68 {dimension_numbers = #tpu.dot_dimension_numbers<[1], [0], [0], [1], [0, 0, 1, 1], [], []>} : vector<128x384xbf16>, vector<384x128xbf16>, vector<128x128xf32> -> vector<128x128xf32>
    %123 = arith.addf %118, %122 : vector<128x128xf32>
    %c32_69 = arith.constant 32 : index
    %c0_70 = arith.constant 0 : index
    %124 = vector.load %arg9[%c32_69, %c0_70] : memref<160x384xbf16, #tpu.memory_space<vmem>>, vector<128x384xbf16>
    %c2_71 = arith.constant 2 : index
    %c0_72 = arith.constant 0 : index
    %c0_73 = arith.constant 0 : index
    %125 = vector.load %arg5[%c2_71, %c0_72, %c0_73] : memref<3x384x128xbf16, #tpu.memory_space<vmem>>, vector<1x384x128xbf16>
    %126 = vector.shape_cast %125 : vector<1x384x128xbf16> to vector<384x128xbf16>
    %cst_74 = arith.constant dense<0.000000e+00> : vector<128x128xf32>
    %127 = tpu.matmul %124, %126, %cst_74 {dimension_numbers = #tpu.dot_dimension_numbers<[1], [0], [0], [1], [0, 0, 1, 1], [], []>} : vector<128x384xbf16>, vector<384x128xbf16>, vector<128x128xf32> -> vector<128x128xf32>
    %128 = arith.addf %123, %127 : vector<128x128xf32>
    %c0_75 = arith.constant 0 : index
    %c0_76 = arith.constant 0 : index
    %129 = vector.load %arg6[%c0_75, %c0_76] : memref<1x128xf32, #tpu.memory_space<vmem>>, vector<1x128xf32>
    %130 = vector.broadcast %129 : vector<1x128xf32> to vector<128x128xf32>
    %131 = arith.addf %128, %130 : vector<128x128xf32>
    %c0_77 = arith.constant 0 : index
    %132 = arith.index_cast %1 : i32 to index
    %c0_78 = arith.constant 0 : index
    %c0_79 = arith.constant 0 : index
    %133 = vector.load %arg2[%c0_77, %132, %c0_78, %c0_79] : memref<1x16x16x128xf32, #tpu.memory_space<vmem>>, vector<1x8x16x128xf32>
    %134 = vector.shape_cast %133 : vector<1x8x16x128xf32> to vector<8x16x128xf32>
    %135 = vector.shape_cast %131 : vector<128x128xf32> to vector<8x16x128xf32>
    %136 = arith.addf %134, %135 : vector<8x16x128xf32>
    %c0_80 = arith.constant 0 : index
    %c0_81 = arith.constant 0 : index
    %c0_82 = arith.constant 0 : index
    %c0_83 = arith.constant 0 : index
    %137 = vector.load %arg7[%c0_80, %c0_81, %c0_82, %c0_83] : memref<1x8x16x128xf32, #tpu.memory_space<vmem>>, vector<1x8x16x128xf32>
    %138 = vector.shape_cast %137 : vector<1x8x16x128xf32> to vector<8x16x128xf32>
    %139 = vector.shape_cast %136 : vector<8x16x128xf32> to vector<1x8x16x128xf32>
    tpu.vector_store %arg7[%c0_80, %c0_81, %c0_82, %c0_83], %139 {strides = array<i32>} : memref<1x8x16x128xf32, #tpu.memory_space<vmem>>, vector<1x8x16x128xf32>,
    return
  }
  func.func @transform_0(%arg0: i32, %arg1: i32) -> (i32, i32, i32, i32) {
    %c0_i32 = arith.constant 0 : i32
    %c0_i32_0 = arith.constant 0 : i32
    %c0_i32_1 = arith.constant 0 : i32
    %c0_i32_2 = arith.constant 0 : i32
    return %arg0, %c0_i32, %c0_i32_0, %c0_i32_1 : i32, i32, i32, i32
  }
  func.func @transform_1(%arg0: i32, %arg1: i32) -> (i32, i32, i32) {
    %c0_i32 = arith.constant 0 : i32
    %c0_i32_0 = arith.constant 0 : i32
    %c0_i32_1 = arith.constant 0 : i32
    %c0_i32_2 = arith.constant 0 : i32
    return %c0_i32, %c0_i32_0, %c0_i32_1 : i32, i32, i32
  }
  func.func @transform_2(%arg0: i32, %arg1: i32) -> (i32, i32) {
    %c0_i32 = arith.constant 0 : i32
    %c0_i32_0 = arith.constant 0 : i32
    %c0_i32_1 = arith.constant 0 : i32
    return %c0_i32, %c0_i32_0 : i32, i32
  }
  func.func @transform_3(%arg0: i32, %arg1: i32) -> (i32, i32, i32) {
    %c0_i32 = arith.constant 0 : i32
    %c0_i32_0 = arith.constant 0 : i32
    %c0_i32_1 = arith.constant 0 : i32
    %c0_i32_2 = arith.constant 0 : i32
    return %c0_i32, %c0_i32_0, %c0_i32_1 : i32, i32, i32
  }
  func.func @transform_4(%arg0: i32, %arg1: i32) -> (i32, i32) {
    %c0_i32 = arith.constant 0 : i32
    %c0_i32_0 = arith.constant 0 : i32
    %c0_i32_1 = arith.constant 0 : i32
    return %c0_i32, %c0_i32_0 : i32, i32
  }
  func.func @transform_5(%arg0: i32, %arg1: i32) -> (i32, i32, i32, i32) {
    %c0_i32 = arith.constant 0 : i32
    %c0_i32_0 = arith.constant 0 : i32
    %c0_i32_1 = arith.constant 0 : i32
    return %arg0, %arg1, %c0_i32, %c0_i32_0 : i32, i32, i32, i32
  }
}

</mosaic_0001>

<bundles_post_ra>
// kernel: tpu_custom_call.1
= control target key start
LH: loop header
LB: loop body
LE: loop exit
PB: predicated region body
PF: predicated region fallthrough
CT: control target
= control target key end

     0   :  { %s6487_s0 = inlined_call_operand.hbm [shape: f32[2,16,16,128], index: 0, kind: input, shape index: {}]   ;;  %s6488_s1 = inlined_call_operand.hbm [shape: bf16[3,384,128], index: 1, kind: input, shape index: {}]   ;;  %s6489_s2 = inlined_call_operand.vmem [shape: f32[1,128], index: 2, kind: input, shape index: {}]   ;;  %s6490_s3 = inlined_call_operand.hbm [shape: bf16[3,384,128], index: 3, kind: input, shape index: {}]   ;;  %s6491_s4 = inlined_call_operand.vmem [shape: f32[1,128], index: 4, kind: input, shape index: {}]   ;;  %s6492_s5 = inlined_call_operand.hbm [shape: f32[2,16,16,128], index: 5, kind: output, shape index: {}]  }
   0x1   :  { %6505 = sst [smem:[#allocation19_spill]] %s6488_s1 }
   0x2   :  { %6506 = sst [smem:[#allocation20_spill]] %s6490_s3 }
   0x3   :  { %6507 = sst [smem:[#allocation21_spill]] %s6492_s5 }
   0x4   :  { %10 = vsyncpa [#allocation5], 0 }
   0x5   :  { %12 = vsyncpa [#allocation5 + $0x1], 0 }
   0x6   :  { %13 = vsyncpa [#allocation8], 0 }
   0x7   :  { %14 = vsyncpa [#allocation6], 0 }
   0x8   :  { %16 = vsyncpa [#allocation6 + $0x1], 0  ;;  %s5253_s18 = smov 0   ;;  %s5255_s19 = smov 0  }
   0x9   :  { %s5257_s20 = smov 0   ;;  %s5259_s21 = smov 0  }
   0xa   :  { %s5261_s22 = smov 0   ;;  %s5263_s23 = smov 0  }
   0xb   :  { %s5265_s24 = smov 0   ;;  %s5267_s25 = smov 0  }
   0xc   :  { %s5269_s26 = smov 0   ;;  %s5271_s27 = smov 0  }
   0xd   :  { %s5273_s28 = smov 0  }
   0xe LB: > { %6508 = sst [smem:[#allocation14_spill]] %s5171_s18  ;;  %s3610_s29 = sadd.s32 4294967295, %s5211_s28   ;;  %s5211_s28 = sphi %s5273_s28, %s22_s28   ;;  %s5207_s27 = sphi %s5271_s27, %s6550_s27   ;;  %s5203_s26 = sphi %s5269_s26, %s6542_s26   ;;  %s5199_s25 = sphi %s5267_s25, %s6549_s25   ;;  %s5195_s24 = sphi %s5265_s24, %s6541_s24   ;;  %s5191_s23 = sphi %s5263_s23, %s6548_s23   ;;  %s5187_s22 = sphi %s5261_s22, %s6547_s22   ;;  %s5183_s21 = sphi %s5259_s21, %s6546_s21   ;;  %s5179_s20 = sphi %s5257_s20, %s6545_s20   ;;  %s5175_s19 = sphi %s5255_s19, %s6544_s19   ;;  %s5171_s18 = sphi %s5253_s18, %s6543_s18  }
   0xf   : > { %6509 = sst [smem:[#allocation15_spill]] %s5203_s26  ;;  %s3611_s30 = sadd.s32 4294967294, %s5211_s28  }
  0x10   : > { %p54_p0 = scmp.ne.s32.totalorder %s5187_s22, %s5183_s21  ;;  %p5309_p1 = scmp.eq.s32.totalorder %s3610_s29, 0 }
  0x11   : > { %p163_p2 = scmp.ne.s32.totalorder %s5179_s20, %s5175_s19  ;;  %p164_p4 = scmp.eq.s32.totalorder %s3610_s29, 3 }
  0x12   : > { %s6510_s6 = scalar_select %p5309_p1, 1, 0 }
  0x13   : > { %p5318_p3 = por %p5309_p1, %p54_p0  ;;  %p169_p5 = scmp.ne.s32.totalorder %s5175_s19, %s5171_s18 }
  0x14   : > { %p170_p6 = scmp.eq.s32.totalorder %s3611_s30, 3  ;;  %p5324_p7 = por %p164_p4, %p163_p2 }
  0x15   : > { %s6511_s8 = scalar_select %p5318_p3, 1, 0 }
  0x16   : > { %s6512_s9 = scalar_select %p5324_p7, 1, 0 }
  0x17   : > { %p3612_p8 = scmp.ge.s32.totalorder %s5211_s28, 1  ;;  %p5329_p9 = por %p170_p6, %p169_p5 }
  0x18   : > { %6513 = sst [smem:[#allocation16_spill]] %s6512_s9  ;;  %p177_p10 = scmp.lt.s32.totalorder %s5211_s28, 5 }
  0x19   : > { %s6514_s10 = scalar_select %p5329_p9, 1, 0 }
  0x1a   : > { %p5334_p11 = pnand %p3612_p8, %p177_p10  ;;  %s5213_s12 = smov [#allocation7]  }
  0x1b   : > { %6515 = sst [smem:[#allocation17_spill]] %s6514_s10  ;;  %s189_s13 = sshll.u32 %s5213_s12, 4  ;;  %s190_s13 = int_to_ptr.vmem [resolvable:$true] %s189_s13 }
  0x1c   : > { %s6516_s11 = scalar_select %p5334_p11, 1, 0 }
  0x1d   : > { %p4738_p12 = pneg %p5334_p11  ;;  %s5214_s15 = smov [#allocation9]  }
  0x1e   : > { %s205_s16 = sshll.u32 %s5214_s15, 4  ;;  %s6518_s1 = sld [smem:[#allocation19_spill]]  ;;  %s5346_s16 = int_to_ptr.vmem [resolvable:$true] %s205_s16 }
  0x1f   : > { %p5342_p13 = pnand %p4738_p12, %p5309_p1 }
  0x21   : > { %p5001_p2 = pneg %p5342_p13 }
  0x24   : > { %s4999_s29 = scalar_lea.hbm %s6518_s1, 9216 }
  0x25   : > { %p5000_p0 = scmp.ne.s32.totalorder %s6518_s1, %s4999_s29  ;;  %p5006_p6 = scmp.lt.u32.totalorder %s4999_s29, %s6518_s1 }
  0x27   : > { %p5002_p4 = pnand %p5001_p2, %p5000_p0 }
  0x29   : > { %p5003_p5 = pneg %p5002_p4 }
  0x2b   : > { %p5008_p8 = pnand %p5006_p6, %p5003_p5 }
  0x2d   : > { %5011 = shalt.err (!%p5008_p8)
}
  0x2e   : > { %s5012_s15 = scalar_lea.vmem %s190_s13, 9216  ;;  %p5020_p7 = scmp.lt.s32.totalorder %s190_s13, %s190_s13 }
  0x2f   : > { %p5013_p10 = scmp.ne.s32.totalorder %s190_s13, %s5012_s15  ;;  %p5021_p1 = scmp.lt.s32.totalorder %s5012_s15, %s5012_s15 }
  0x31   : > { %p5015_p12 = pnand %p5013_p10, %p5001_p2  ;;  %p5022_p3 = por %p5021_p1, %p5020_p7 }
  0x33   : > { %p5016_p9 = pneg %p5015_p12 }
  0x35   : > { %p5023_p11 = pnand %p5022_p3, %p5016_p9 }
  0x37   : > { %5026 = shalt.err (!%p5023_p11)
}
  0x38   : > { %s5215_s17 = smov 64   ;;  %s5216_s21 = smov 4  }
  0x39   : > { %4741 = dma.hbm_to_vmem [thread:$0]  (!%p5342_p13), %s6518_s1, 9216, %s190_s13, [#allocation8], %s5215_s17, %s5215_s17, %s5216_s21  }
  0x3a   : > { %s6519_s3 = sld [smem:[#allocation20_spill]] }
  0x40   : > { %s5027_s12 = scalar_lea.hbm %s6519_s3, 9216 }
  0x41   : > { %p5028_p0 = scmp.ne.s32.totalorder %s6519_s3, %s5027_s12  ;;  %p5034_p7 = scmp.lt.u32.totalorder %s5027_s12, %s6519_s3 }
  0x43   : > { %p5030_p1 = pnand %p5028_p0, %p5001_p2 }
  0x45   : > { %p5031_p3 = pneg %p5030_p1 }
  0x47   : > { %p5036_p9 = pnand %p5034_p7, %p5031_p3 }
  0x49   : > { %5039 = shalt.err (!%p5036_p9)
}
  0x4a   : > { %s5040_s13 = scalar_lea.vmem %s5346_s16, 9216  ;;  %p5048_p6 = scmp.lt.s32.totalorder %s5346_s16, %s5346_s16 }
  0x4b   : > { %p5041_p11 = scmp.ne.s32.totalorder %s5346_s16, %s5040_s13  ;;  %p5049_p8 = scmp.lt.s32.totalorder %s5040_s13, %s5040_s13 }
  0x4d   : > { %p5043_p4 = pnand %p5041_p11, %p5001_p2  ;;  %p5050_p10 = por %p5049_p8, %p5048_p6 }
  0x4f   : > { %p5044_p5 = pneg %p5043_p4 }
  0x51   : > { %p5051_p12 = pnand %p5050_p10, %p5044_p5 }
  0x53   : > { %5054 = shalt.err (!%p5051_p12)
}
  0x54   : > { %4744 = dma.hbm_to_vmem [thread:$0]  (!%p5342_p13), %s6519_s3, 9216, %s5346_s16, [#allocation8], %s5215_s17, %s5215_s17, %s5216_s21  }
  0x55   : > { %s31_s9 = sadd.s32 1, %s5203_s26  ;;  %s34_s7 = sadd.s32 1, %s5207_s27 }
  0x56   : > { %p32_p2 = scmp.ge.s32.totalorder %s31_s9, 2  ;;  %s41_s14 = sadd.s32 1, %s5191_s23 }
  0x57   : > { %p48_p0 = scmp.ne.s32.totalorder %s5191_s23, %s5187_s22  ;;  %p49_p1 = scmp.eq.s32.totalorder %s5211_s28, 0 }
  0x58   : > { %s6552_s9 = smov (%p32_p2, %s31_s9), 0  ;;  %s6554_s7 = smov (!%p32_p2, %s34_s7), %s5207_s27 }
  0x59   : > { %6520 = sst [smem:[#allocation18_spill]] %s6552_s9  ;;  %p5404_p3 = por %p49_p1, %p48_p0 }
  0x5a   : > { %s149_s29 = ssub.s32 %s5203_s26, %s6552_s9  ;;  %p36_p13 = scmp.ge.s32.totalorder %s6554_s7, 2 }
  0x5b   : > { %p4755_p7 = scmp.lt.s32.totalorder %s5211_s28, 4  ;;  %s222_s16 = sand.u32 1, %s5191_s23  }
  0x5c   : > { %s3809_s17 = sshll.u32 %s5207_s27, 12  ;;  %s6556_s7 = smov (%p36_p13, %s6554_s7), 0 }
  0x5d   : > { %s3616_s21 = sshll.u32 %s222_s16, 8  ;;  %s38_s30 = ssub.s32 %s5207_s27, %s6556_s7 }
  0x5e   : > { %p39_p9 = scmp.eq.s32.totalorder %s38_s30, 0  ;;  %s150_s12 = sor.u32 %s149_s29, %s38_s30 }
  0x5f   : > { %p151_p11 = scmp.eq.s32.totalorder %s150_s12, 0  ;;  %s5420_s5 = scalar_lea.hbm %s6487_s0, %s3809_s17 }
  0x60   : > { %s5423_s18 = scalar_select %p39_p9, %s5191_s23, %s41_s14  }
  0x61   : > { %s6522_s1 = sadd.s32 1, %s5179_s20  ;;  %s226_s9 = scalar_lea.vmem [#allocation4], %s3616_s21 }
  0x62   : > { %s5428_s3 = scalar_select %p151_p11, %s5179_s20, %s6522_s1  }
  0x63   : > { %s233_s26 = sshll.u32 %s226_s9, 4  ;;  %p5434_p4 = pnand %p4755_p7, %p5404_p3  ;;  %s5438_s26 = int_to_ptr.vmem [resolvable:$true] %s233_s26 }
  0x64   : > { %s5440_s17 = scalar_lea.sflag [#allocation5], %s222_s16  ;;  %s5055_s14 = scalar_lea.hbm %s5420_s5, 4096 }
  0x65   : > { %p5056_p5 = scmp.ne.s32.totalorder %s5420_s5, %s5055_s14  ;;  %p5057_p6 = pneg %p5434_p4 }
  0x66   : > { %s5060_s10 = scalar_lea.hbm %s6487_s0, 8192  ;;  %p5061_p12 = scmp.lt.u32.totalorder %s5420_s5, %s6487_s0 }
  0x67   : > { %p5058_p8 = pnand %p5057_p6, %p5056_p5  ;;  %p5062_p2 = scmp.lt.u32.totalorder %s5060_s10, %s5055_s14 }
  0x68   : > { %p5064_p1 = scmp.lt.u32.totalorder %s5055_s14, %s5420_s5 }
  0x69   : > { %p5059_p10 = pneg %p5058_p8  ;;  %p5063_p0 = por %p5062_p2, %p5061_p12 }
  0x6b   : > { %p5065_p3 = por %p5064_p1, %p5063_p0 }
  0x6d   : > { %p5066_p13 = pnand %p5065_p3, %p5059_p10 }
  0x6f   : > { %5069 = shalt.err (!%p5066_p13)
}
  0x70   : > { %s5070_s16 = scalar_lea.vmem %s5438_s26, 4096  ;;  %s5217_s12 = smov [#allocation4]  }
  0x71   : > { %p5071_p7 = scmp.ne.s32.totalorder %s5438_s26, %s5070_s16  ;;  %s5075_s15 = sshll.u32 %s5217_s12, 4  ;;  %s5076_s15 = int_to_ptr.vmem [resolvable:$false] %s5075_s15 }
  0x72   : > { %s5077_s13 = scalar_lea.vmem %s5076_s15, 8192  ;;  %p5078_p5 = scmp.lt.s32.totalorder %s5438_s26, %s5076_s15 }
  0x73   : > { %p5073_p9 = pnand %p5071_p7, %p5057_p6  ;;  %p5079_p8 = scmp.lt.s32.totalorder %s5077_s13, %s5070_s16 }
  0x75   : > { %p5074_p11 = pneg %p5073_p9  ;;  %p5080_p12 = por %p5079_p8, %p5078_p5 }
  0x77   : > { %p5081_p2 = pnand %p5080_p12, %p5074_p11 }
  0x79   : > { %5084 = shalt.err (!%p5081_p2)
}
  0x7a   : > { %s5218_s14 = smov 128   ;;  %s5219_s1 = smov 8  }
  0x7b   : > { %4748 = dma.hbm_to_vmem [thread:$0]  (!%p5434_p4), %s5420_s5, 4096, %s5438_s26, %s5440_s17, %s5218_s14, %s5218_s14, %s5219_s1  }
  0x7c   : > { %p6524_p6 = scmp.ne.s32.totalorder %s6516_s11, 0 }
  0x7d   : > { %s247_s9 = sand.u32 (!%p6524_p6), 1, %s5187_s22   ;;  %p6525_p10 = scmp.ne.s32.totalorder (!%p6524_p6), %s6511_s8, 0 }
  0x7e   : > { %245 = sbr.rel (%p6524_p6) target bundleno = 954 (0x3ba), region = 40  ;;  %s3620_s10 = sshll.u32 (!%p6524_p6), %s247_s9, 8 }
  0x7f   : > { %s248_s21 = scalar_lea.sflag (!%p6524_p6), [#allocation5], %s247_s9  ;;  %s5471_s30 = scalar_lea.vmem (!%p6524_p6), [#allocation4], %s3620_s10 }
  0x85   : > { %5158 = dma.done.wait (%p6525_p10), %s248_s21, 4096  }
  0x86   : > { %5160 = vsyncadd (%p6525_p10), %s248_s21, 4294963200  ;;  %p6526_p0 = scmp.ne.s32.totalorder %s6510_s6, 0 }
  0x88   : > { %5162 = dma.done.wait (%p6526_p0), [#allocation8], 18432  }
  0x89   : > { %5164 = vsyncadd (%p6526_p0), [#allocation8], 4294948864  ;;  %v4855_v0 = vld [vmem:[#allocation7 + $0x100] sm:$0xff]   ;;  %v4859_v4 = vld [vmem:[#allocation7 + $0x108] sm:$0xff]   ;;  %s5482_s26 = sshll.u32 %s5195_s24, 3  ;;  %s3810_s12 = sshll.u32 %s5195_s24, 7 }
  0x8a   : > { %v4856_v1 = vld [vmem:[#allocation7 + $0x40] sm:$0xff]   ;;  %3820 = vmatprep.subr.bf16.mxu0 %v4855_v0  ;;  %v4860_v5 = vld [vmem:[#allocation7 + $0x48] sm:$0xff]   ;;  %v4863_v8 = vld [vmem:[#allocation7 + $0x110] sm:$0xff]   ;;  %s5485_s6 = sadd.s32 4294967295, %s5482_s26  ;;  %s5488_s8 = sadd.s32 4294967294, %s5482_s26  ;;  %vm511_vm0 = vcmask 1040384  }
  0x8b   : > { %v4857_v2 = vld [vmem:[#allocation7 + $0xc0] sm:$0xff]   ;;  %3914 = vmatprep.subr.bf16.mxu1 %v4856_v1  ;;  %v4861_v6 = vld [vmem:[#allocation7 + $0xc8] sm:$0xff]   ;;  %v4864_v9 = vld [vmem:[#allocation7 + $0x50] sm:$0xff]   ;;  %p326_p4 = scmp.gt.s32.totalorder %s5485_s6, 0  ;;  %p308_p1 = scmp.gt.s32.totalorder %s5488_s8, 0  ;;  %vm562_vm3 = vcmask 1047552  }
  0x8c   : > { %v4858_v3 = vld [vmem:[#allocation7] sm:$0xff]   ;;  %3821 = vmatpush3.bf16.msra.mxu0 %v4857_v2  ;;  %v4862_v7 = vld [vmem:[#allocation7 + $0x8] sm:$0xff]   ;;  %v4865_v10 = vld [vmem:[#allocation7 + $0xd0] sm:$0xff]   ;;  %p3635_p3 = scmp.lt.s32.totalorder %s5485_s6, 15  ;;  %p3627_p13 = scmp.lt.s32.totalorder %s5488_s8, 15 }
  0x8d   : > { %3915 = vmatpush3.bf16.msra.mxu1 %v4858_v3  ;;  %3822 = vmatprep.subr.bf16.mxu0 %v4859_v4  ;;  %v4866_v11 = vld [vmem:[#allocation7 + $0x10] sm:$0xff]   ;;  %v4867_v12 = vld [vmem:[#allocation7 + $0x118] sm:$0xff]   ;;  %v4871_v16 = vld [vmem:[#allocation7 + $0x120] sm:$0xff]   ;;  %s327_s11 = scalar_select %p326_p4, %s5485_s6, 0  ;;  %vm512_vm1 = vsmask.f32 256 }
  0x8e   : > { %3916 = vmatprep.subr.bf16.mxu1 %v4860_v5  ;;  %v4868_v13 = vld [vmem:[#allocation7 + $0x58] sm:$0xff]   ;;  %v4872_v17 = vld [vmem:[#allocation7 + $0x60] sm:$0xff]   ;;  %s309_s5 = scalar_select %p308_p1, %s5488_s8, 0  ;;  %v4875_v20 = vld [vmem:[#allocation7 + $0x128] sm:$0xff]   ;;  %vm563_vm4 = vsmask.f32 7424 }
  0x8f   : > { %v4869_v14 = vld [vmem:[#allocation7 + $0xd8] sm:$0xff]   ;;  %v4873_v18 = vld [vmem:[#allocation7 + $0xe0] sm:$0xff]   ;;  %p334_p7 = scmp.ge.s32.totalorder %s5485_s6, 0  ;;  %v4876_v21 = vld [vmem:[#allocation7 + $0x68] sm:$0xff]   ;;  %p335_p9 = scmp.lt.s32.totalorder %s5485_s6, 16 }
  0x90   : > { %3823 = vmatpush3.bf16.msra.mxu0 %v4861_v6  ;;  %v4870_v15 = vld [vmem:[#allocation7 + $0x18] sm:$0xff]   ;;  %v4874_v19 = vld [vmem:[#allocation7 + $0x20] sm:$0xff]   ;;  %v4877_v22 = vld [vmem:[#allocation7 + $0xe8] sm:$0xff]   ;;  %s6558_s11 = smov (!%p3635_p3, %s327_s11), 15  ;;  %s6560_s5 = smov (!%p3627_p13, %s309_s5), 15 }
  0x91   : > { %3917 = vmatpush3.bf16.msra.mxu1 %v4862_v7  ;;  %3824 = vmatprep.subr.bf16.mxu0 %v4863_v8  ;;  %v4878_v23 = vld [vmem:[#allocation7 + $0x28] sm:$0xff]   ;;  %v4879_v24 = vld [vmem:[#allocation7 + $0x130] sm:$0xff]   ;;  %p316_p11 = scmp.ge.s32.totalorder %s5488_s8, 0  ;;  %p317_p5 = scmp.lt.s32.totalorder %s5488_s8, 16  ;;  %v4883_v28 = vld [vmem:[#allocation7 + $0x138] sm:$0xff]  }
  0x92   : > { %3918 = vmatprep.subr.bf16.mxu1 %v4864_v9  ;;  %v4880_v25 = vld [vmem:[#allocation7 + $0x70] sm:$0xff]   ;;  %s3640_s29 = sshll.u32 %s6558_s11, 4  ;;  %s3632_s17 = sshll.u32 %s6560_s5, 4  ;;  %v4884_v29 = vld [vmem:[#allocation7 + $0x78] sm:$0xff]   ;;  %v4887_v36 = vld [vmem:[#allocation7 + $0x140] sm:$0xff]  }
  0x93   : > { %v4881_v26 = vld [vmem:[#allocation7 + $0xf0] sm:$0xff]   ;;  %p5506_p8 = pnand %p335_p9, %p334_p7  ;;  %s331_s15 = scalar_lea.vmem %s5471_s30, %s3640_s29 [#allocation4]  ;;  %v4885_v30 = vld [vmem:[#allocation7 + $0xf8] sm:$0xff]   ;;  %v4891_v55 = vld [vmem:[#allocation7 + $0x80] sm:$0xff]  }
  0x94   : > { %3825 = vmatpush3.bf16.msra.mxu0 %v4865_v10  ;;  %v4882_v27 = vld [vmem:[#allocation7 + $0x30] sm:$0xff]   ;;  %p5516_p12 = pnand %p317_p5, %p316_p11  ;;  %s313_s14 = scalar_lea.vmem %s5471_s30, %s3632_s17 [#allocation4]  ;;  %v4886_v31 = vld [vmem:[#allocation7 + $0x38] sm:$0xff]   ;;  %v332_v32 = vld [vmem:[%s331_s15] sm:$0xff] }
  0x95   : > { %3919 = vmatpush3.bf16.msra.mxu1 %v4866_v11  ;;  %3826 = vmatprep.subr.bf16.mxu0 %v4867_v12  ;;  %s5522_s1 = scalar_lea.vmem %s5471_s30, %s3810_s12 [#allocation4]  ;;  %v333_v33 = vld [vmem:[%s331_s15 + $0x8] sm:$0xff]  ;;  %v314_v34 = vld [vmem:[%s313_s14] sm:$0xff]  ;;  %vm5540_vm2 = vmand %vm511_vm0, %vm512_vm1  ;;  %s5545_s11 = sadd.s32 8, %s5482_s26 }
  0x96   : > { %3920 = vmatprep.subr.bf16.mxu1 %v4868_v13  ;;  %s3641_s9 = scalar_select %p5506_p8, 0, 1  ;;  %v315_v35 = vld [vmem:[%s313_s14 + $0x8] sm:$0xff]  ;;  %v291_v37 = vld [vmem:[%s5522_s1] sm:$0xff]  ;;  %v293_v50 = vld [vmem:[%s5522_s1 + $0x10] sm:$0xff] }
  0x97   : > { %s3633_s10 = scalar_select %p5516_p12, 0, 1  ;;  %v292_v38 = vld [vmem:[%s5522_s1 + $0x8] sm:$0xff]  ;;  %v383_v39 = vmax.f32 %v291_v37, 0.0  ;;  %v294_v53 = vld [vmem:[%s5522_s1 + $0x18] sm:$0xff]  ;;  %v385_v57 = vmax.f32 %v293_v50, 0.0  ;;  %vm5686_vm5 = vmand %vm562_vm3, %vm563_vm4 }
  0x98   : > { %3827 = vmatpush3.bf16.msra.mxu0 %v4869_v14  ;;  %s339_s21 = scvt.s32.f32 %s3641_s9  ;;  %v384_v40 = vmax.f32 %v292_v38, 0.0  ;;  %v386_v61 = vmax.f32 %v294_v53, 0.0  ;;  %v295_v3 = vld [vmem:[%s5522_s1 + $0x20] sm:$0xff]  ;;  %v296_v4 = vld [vmem:[%s5522_s1 + $0x28] sm:$0xff]  ;;  %p344_p2 = scmp.gt.s32.totalorder %s5545_s11, 0  ;;  %v301_v50 = vld [vmem:[%s5522_s1 + $0x50] sm:$0xff] }
  0x99   : > { %3921 = vmatpush3.bf16.msra.mxu1 %v4870_v15  ;;  %3828 = vmatprep.subr.bf16.mxu0 %v4871_v16  ;;  %s321_s8 = scvt.s32.f32 %s3633_s10  ;;  %v4888_v10 = vld [vmem:[#allocation7 + $0x148] sm:$0xff]   ;;  %v387_v13 = vmax.f32 %v295_v3, 0.0  ;;  %v388_v14 = vmax.f32 %v296_v4, 0.0  ;;  %p3642_p6 = scmp.lt.s32.totalorder %s5545_s11, 15 }
  0x9a   : > { %3922 = vmatprep.subr.bf16.mxu1 %v4872_v17  ;;  %v340_v41 = vstv %s339_s21  ;;  %v5530_v49 = vpack.c.bf16 %v384_v40, %v383_v39  ;;  %v5552_v8 = vpack.c.bf16 %v386_v61, %v385_v57  ;;  %v4893_v16 = vld [vmem:[#allocation7 + $0x88] sm:$0xff]   ;;  %s345_s5 = scalar_select %p344_p2, %s5545_s11, 0  ;;  %v303_v61 = vld [vmem:[%s5522_s1 + $0x60] sm:$0xff] }
  0x9b   : > { %v341_v42 = vmul.f32 %v340_v41, %v332_v32  ;;  %v342_v43 = vmul.f32 %v340_v41, %v333_v33  ;;  %v322_v44 = vstv %s321_s8  ;;  %p352_p10 = scmp.ge.s32.totalorder %s5545_s11, 0  ;;  %p353_p0 = scmp.lt.s32.totalorder %s5545_s11, 16  ;;  %v299_v32 = vld [vmem:[%s5522_s1 + $0x40] sm:$0xff]  ;;  %v304_v4 = vld [vmem:[%s5522_s1 + $0x68] sm:$0xff] }
  0x9c   : > { %3829 = vmatpush3.bf16.msra.mxu0 %v4873_v18  ;;  %v323_v45 = vmul.f32 %v322_v44, %v314_v34  ;;  %v324_v46 = vmul.f32 %v322_v44, %v315_v35  ;;  %v430_v60 = vshrl.u32 %v5530_v49, 16  ;;  %v433_v7 = vshll.u32 %v5530_v49, 16  ;;  %v300_v34 = vld [vmem:[%s5522_s1 + $0x48] sm:$0xff]  ;;  %s6562_s5 = smov (!%p3642_p6, %s345_s5), 15  ;;  %s5818_s13 = sadd.s32 9, %s5482_s26 }
  0x9d   : > { %3923 = vmatpush3.bf16.msra.mxu1 %v4874_v19  ;;  %3830 = vmatprep.subr.bf16.mxu0 %v4875_v20  ;;  %v381_v47 = vmax.f32 %v341_v42, 0.0  ;;  %v382_v48 = vmax.f32 %v342_v43, 0.0  ;;  %v437_v18 = vshrl.u32 %v5552_v8, 16  ;;  %v4889_v19 = vld [vmem:[#allocation7 + $0x150] sm:$0xff]   ;;  %v391_v40 = vmax.f32 %v299_v32, 0.0  ;;  %v4892_v42 = vld [vmem:[#allocation7 + $0x160] sm:$0xff]   ;;  %p5601_p4 = pnand %p353_p0, %p352_p10 }
  0x9e   : > { %3924 = vmatprep.subr.bf16.mxu1 %v4876_v21  ;;  %v379_v51 = vmax.f32 %v323_v45, 0.0  ;;  %v380_v52 = vmax.f32 %v324_v46, 0.0  ;;  %v432_v6 = vrot.slane %v430_v60, 7  ;;  %v530_v12 = vrot.slane %v433_v7, 1  ;;  %v4898_v43 = vld [vmem:[#allocation7 + $0xa0] sm:$0xff]   ;;  %s3647_s16 = sshll.u32 %s6562_s5, 4 }
  0x9f   : > { %v404_v54 = vpack.c.bf16 %v382_v48, %v381_v47  ;;  %v5564_v21 = vpack.c.bf16 %v388_v14, %v387_v13  ;;  %v392_v41 = vmax.f32 %v300_v34, 0.0  ;;  %s3648_s17 = scalar_select %p5601_p4, 0, 1  ;;  %v4902_v13 = vld [vmem:[#allocation7 + $0xb8] sm:$0xff]  }
  0xa0   : > { %3831 = vmatpush3.bf16.msra.mxu0 %v4877_v22  ;;  %v5534_v56 = vpack.c.bf16 %v380_v52, %v379_v51  ;;  %v435_v17 = vor.u32 %v433_v7, %v432_v6  ;;  %v297_v22 = vld [vmem:[%s5522_s1 + $0x30] sm:$0xff]  ;;  %v302_v51 = vld [vmem:[%s5522_s1 + $0x58] sm:$0xff]  ;;  %v4894_v52 = vld [vmem:[#allocation7 + $0x168] sm:$0xff]   ;;  %s349_s12 = scalar_lea.vmem %s5471_s30, %s3647_s16 [#allocation4]  ;;  %v395_v6 = vmax.f32 %v303_v61, 0.0  ;;  %p362_p1 = scmp.gt.s32.totalorder %s5818_s13, 0 }
  0xa1   : > { %3925 = vmatpush3.bf16.msra.mxu1 %v4878_v23  ;;  %3832 = vmatprep.subr.bf16.mxu0 %v4879_v24  ;;  %v423_v58 = vshrl.u32 %v404_v54, 16  ;;  %v426_v59 = vshll.u32 %v404_v54, 16  ;;  %v5570_v23 = vor.u32 %v530_v12, %v430_v60  ;;  %v4895_v24 = vld [vmem:[#allocation7 + $0x90] sm:$0xff]   ;;  %v444_v33 = vshrl.u32 %v5564_v21, 16  ;;  %s5646_s15 = scvt.s32.f32 %s3648_s17  ;;  %v4900_v7 = vld [vmem:[#allocation7 + $0x178] sm:$0xff]   ;;  %p370_p3 = scmp.ge.s32.totalorder %s5818_s13, 0 }
  0xa2   : > { %3926 = vmatprep.subr.bf16.mxu1 %v4880_v25  ;;  %919 = vmatprep.mubr.bf16.mxu0 %v404_v54  ;;  %v416_v62 = vshrl.u32 %v5534_v56, 16  ;;  %v419_v63 = vshll.u32 %v5534_v56, 16  ;;  %v447_v38 = vshll.u32 %v5564_v21, 16  ;;  %v5631_v57 = vpack.c.bf16 %v392_v41, %v391_v40  ;;  %v306_v12 = vld [vmem:[%s5522_s1 + $0x78] sm:$0xff]  ;;  %p371_p13 = scmp.lt.s32.totalorder %s5818_s13, 16  ;;  %p3649_p9 = scmp.lt.s32.totalorder %s5818_s13, 15 }
  0xa3   : > { %1289 = vmatprep.mubr.bf16.mxu1 %v5534_v56  ;;  %v425_v0 = vrot.slane %v423_v58, 7  ;;  %v528_v20 = vrot.slane %v426_v59, 1  ;;  %v446_v39 = vrot.slane %v444_v33, 7  ;;  %v394_v60 = vmax.f32 %v302_v51, 0.0  ;;  %s363_s26 = scalar_select %p362_p1, %s5818_s13, 0 }
  0xa4   : > { %3833 = vmatpush3.bf16.msra.mxu0 %v4881_v26  ;;  %v418_v2 = vrot.slane %v416_v62, 7  ;;  %v5578_v26 = vsel %vm5540_vm2, 0, %v435_v17  ;;  %v526_v44 = vrot.slane %v419_v63, 1  ;;  %v458_v3 = vshrl.u32 %v5631_v57, 16  ;;  %v351_v17 = vld [vmem:[%s349_s12 + $0x8] sm:$0xff]  ;;  %p372_p11 = pnand %p371_p13, %p370_p3  ;;  %s283_s17 = sand.u32 1, %s5175_s19  }
  0xa5   : > { %3927 = vmatpush3.bf16.msra.mxu1 %v4882_v27  ;;  %3834 = vmatprep.subr.bf16.mxu0 %v4883_v28  ;;  %v428_v5 = vor.u32 %v426_v59, %v425_v0  ;;  %v5574_v25 = vor.u32 %v528_v20, %v423_v58  ;;  %v439_v27 = vrot.slane %v437_v18, 7  ;;  %v440_v28 = vshll.u32 %v5552_v8, 16  ;;  %v4901_v0 = vld [vmem:[#allocation7 + $0xb0] sm:$0xff]   ;;  %v4903_v20 = vld [vmem:[#allocation7 + $0x1c0] sm:$0xff]   ;;  %s6564_s26 = smov (!%p3649_p9, %s363_s26), 15  ;;  %s6535_s8 = sld [smem:[#allocation21_spill]] }
  0xa6   : > { %3928 = vmatprep.subr.bf16.mxu1 %v4884_v29  ;;  %v421_v9 = vor.u32 %v419_v63, %v418_v2  ;;  %v4890_v29 = vld [vmem:[#allocation7 + $0x158] sm:$0xff]   ;;  %v5615_v47 = vor.u32 %v526_v44, %v416_v62  ;;  %v449_v56 = vor.u32 %v447_v38, %v446_v39  ;;  %v393_v58 = vmax.f32 %v301_v50, 0.0  ;;  %v4896_v62 = vld [vmem:[#allocation7 + $0x170] sm:$0xff]   ;;  %s3655_s14 = scalar_select %p372_p11, 0, 1 }
  0xa7   : > { %v515_v11 = vsel %vm5540_vm2, 0, %v428_v5  ;;  %v442_v37 = vor.u32 %v440_v28, %v439_v27  ;;  %v532_v48 = vrot.slane %v440_v28, 1  ;;  %v461_v14 = vshll.u32 %v5631_v57, 16  ;;  %v5669_v27 = vld [vmem:[#allocation7 + $0x200] sm:$0xff]   ;;  %s3654_s9 = sshll.u32 %s6564_s26, 4  ;;  %s3819_s26 = sshll.u32 %s5195_s24, 4 }
  0xa8   : > { %3835 = vmatpush3.bf16.msra.mxu0 %v4885_v30  ;;  %v514_v15 = vsel %vm5540_vm2, 0, %v421_v9  ;;  %v298_v30 = vld [vmem:[%s5522_s1 + $0x38] sm:$0xff]  ;;  %v5641_v2 = vsel %vm5540_vm2, 0, %v449_v56  ;;  %v5648_v5 = vpack.c.bf16 %v394_v60, %v393_v58  ;;  %s375_s10 = scvt.s32.f32 %s3655_s14  ;;  %s367_s21 = scalar_lea.vmem %s5471_s30, %s3654_s9 [#allocation4] }
  0xa9   : > { %3929 = vmatpush3.bf16.msra.mxu1 %v4886_v31  ;;  %4342 = vmatprep.subr.bf16.mxu0 %v4887_v36  ;;  %v389_v31 = vmax.f32 %v297_v22, 0.0  ;;  %v390_v35 = vmax.f32 %v298_v30, 0.0  ;;  %v5611_v46 = vsel %vm5540_vm2, 0, %v442_v37  ;;  %s1999_s30 = scalar_select %p334_p7, 1, 0 }
  0xaa   : > { %4378 = vmatprep.subr.bf16.mxu1 %v4891_v55  ;;  %v468_v34 = vshll.u32 %v5648_v5, 16  ;;  %s2001_s6 = scalar_select %p353_p0, 1, 0 }
  0xab   : > { %920 = vmatmul.mubr.bf16.vlgmr.msra.gmra.mrb[0].mxu0 %v515_v11  ;;  %v5607_v45 = vpack.c.bf16 %v390_v35, %v389_v31  ;;  %s2000_s29 = scvt.s32.f32 %s1999_s30  ;;  %s3805_s14 = sshll.u32 %s5199_s25, 5 }
  0xac   : > { %1290 = vmatmul.mubr.bf16.vlgmr.msra.gmra.mrb[0].mxu1 %v514_v15  ;;  %4343 = vmatpush3.bf16.msra.mxu0 %v4887_v36  ;;  %v4897_v36 = vld [vmem:[#allocation7 + $0x98] sm:$0xff]   ;;  %v350_v15 = vld [vmem:[%s349_s12] sm:$0xff]  ;;  %s2002_s11 = scvt.s32.f32 %s2001_s6  ;;  %s3491_s9 = sadd.s32 %s3819_s26, %s3805_s14 }
  0xad   : > { %927 = vmatprep.mubr.bf16.mxu0 %v5530_v49  ;;  %1297 = vmatprep.mubr.bf16.mxu1 %v404_v54  ;;  %v451_v53 = vshrl.u32 %v5607_v45, 16  ;;  %v4899_v54 = vld [vmem:[#allocation7 + $0xa8] sm:$0xff]   ;;  %v454_v59 = vshll.u32 %v5607_v45, 16  ;;  %s3806_s24 = sshll.u32 %s3491_s9, 7  ;;  %s5220_s6 = smov [#allocation10]  }
  0xae   : > { %4344 = vmatprep.subr.bf16.mxu0 %v4888_v10  ;;  %4379 = vmatpush3.bf16.msra.mxu1 %v4891_v55  ;;  %v5625_v55 = vor.u32 %v532_v48, %v437_v18  ;;  %v358_v18 = vstv %s5646_s15  ;;  %s3623_s15 = sshll.u32 %s283_s17, 7  ;;  %s6417_s5 = scalar_lea.hbm %s6535_s8, %s3806_s24 }
  0xaf   : > { %4380 = vmatprep.subr.bf16.mxu1 %v4893_v16  ;;  %v453_v63 = vrot.slane %v451_v53, 7  ;;  %v359_v30 = vmul.f32 %v358_v18, %v350_v15  ;;  %v360_v31 = vmul.f32 %v358_v18, %v351_v17  ;;  %v4905_v15 = vld [vmem:[#allocation7 + $0x1c8] sm:$0xff]   ;;  %v4913_v18 = vld [vmem:[#allocation7 + $0x210] sm:$0xff]   ;;  %s6360_s13 = scalar_lea.vmem [#allocation10], %s3623_s15 }
  0xb0   : > { %4345 = vmatpush3.bf16.msra.mxu0 %v4888_v10  ;;  %v396_v10 = vmax.f32 %v304_v4, 0.0  ;;  %v4906_v17 = vld [vmem:[#allocation7 + $0x188] sm:$0xff]   ;;  %s3494_s25 = sshll.u32 %s6360_s13, 4  ;;  %s6419_s25 = int_to_ptr.vmem [resolvable:$true] %s3494_s25 }
  0xb1   : > { %4346 = vmatprep.subr.bf16.mxu0 %v4889_v19  ;;  %v456_v9 = vor.u32 %v454_v59, %v453_v63  ;;  %v399_v39 = vmax.f32 %v359_v30, 0.0  ;;  %v400_v40 = vmax.f32 %v360_v31, 0.0  ;;  %v4912_v31 = vld [vmem:[#allocation7 + $0x198] sm:$0xff]  }
  0xb2   : > { %4381 = vmatpush3.bf16.msra.mxu1 %v4893_v16  ;;  %v460_v16 = vrot.slane %v458_v3, 7 }
  0xb3   : > { %928 = vmatmul.mubr.bf16.gmra.mrb[4].mxu0 %v5578_v26  ;;  %4382 = vmatprep.subr.bf16.mxu1 %v4895_v24  ;;  %v5665_v22 = vsel %vm5540_vm2, 0, %v456_v9  ;;  %v5698_v51 = vpack.c.bf16 %v400_v40, %v399_v39  ;;  %v4916_v39 = vld [vmem:[#allocation7 + $0x1a0] sm:$0xff]  }
  0xb4   : > { %1298 = vmatmul.mubr.bf16.gmra.mrb[4].mxu1 %v515_v11  ;;  %935 = vmatprep.mubr.bf16.mxu0 %v5552_v8  ;;  %v305_v11 = vld [vmem:[%s5522_s1 + $0x70] sm:$0xff]  ;;  %v463_v35 = vor.u32 %v461_v14, %v460_v16  ;;  %v4910_v16 = vld [vmem:[#allocation7 + $0x208] sm:$0xff]  }
  0xb5   : > { %1305 = vmatprep.mubr.bf16.mxu1 %v5530_v49  ;;  %4347 = vmatpush3.bf16.msra.mxu0 %v4889_v19  ;;  %v465_v19 = vshrl.u32 %v5648_v5, 16  ;;  %v397_v28 = vmax.f32 %v305_v11, 0.0  ;;  %v486_v60 = vshrl.u32 %v5698_v51, 16  ;;  %v489_v61 = vshll.u32 %v5698_v51, 16 }
  0xb6   : > { %4348 = vmatprep.subr.bf16.mxu0 %v4890_v29  ;;  %4383 = vmatpush3.bf16.msra.mxu1 %v4895_v24  ;;  %v5667_v24 = vpack.c.bf16 %v396_v10, %v395_v6  ;;  %v5737_v6 = vsel %vm5686_vm5, %v5570_v23, 0  ;;  %v565_v10 = vsel %vm5686_vm5, %v5615_v47, 0  ;;  %v5758_v23 = vsel %vm5686_vm5, %v5625_v55, 0  ;;  %v4904_v55 = vld [vmem:[#allocation7 + $0x180] sm:$0xff]  }
  0xb7   : > { %4384 = vmatprep.subr.bf16.mxu1 %v4897_v36  ;;  %v467_v32 = vrot.slane %v465_v19, 7  ;;  %v488_v63 = vrot.slane %v486_v60, 7 }
  0xb8   : > { %v475_v48 = vshll.u32 %v5667_v24, 16 }
  0xb9   : > { %4349 = vmatpush3.bf16.msra.mxu0 %v4890_v29  ;;  %v398_v29 = vmax.f32 %v306_v12, 0.0  ;;  %v491_v9 = vor.u32 %v489_v61, %v488_v63  ;;  %v538_v12 = vrot.slane %v461_v14, 1  ;;  %v4908_v14 = vld [vmem:[#allocation7 + $0x1d0] sm:$0xff]  }
  0xba   : > { %4350 = vmatprep.subr.bf16.mxu0 %v4892_v42  ;;  %4385 = vmatpush3.bf16.msra.mxu1 %v4897_v36  ;;  %v472_v36 = vshrl.u32 %v5667_v24, 16 }
  0xbb   : > { %936 = vmatmul.mubr.bf16.gmra.mrb[8].mxu0 %v5611_v46  ;;  %4386 = vmatprep.subr.bf16.mxu1 %v4898_v43  ;;  %v5681_v37 = vpack.c.bf16 %v398_v29, %v397_v28  ;;  %v5767_v47 = vsel %vm5540_vm2, 0, %v491_v9  ;;  %v4911_v28 = vld [vmem:[#allocation7 + $0x1d8] sm:$0xff]   ;;  %v539_v30 = vor.u32 %v538_v12, %v458_v3  ;;  %v542_v3 = vrot.slane %v475_v48, 1 }
  0xbc   : > { %1306 = vmatmul.mubr.bf16.gmra.mrb[8].mxu1 %v5578_v26  ;;  %943 = vmatprep.mubr.bf16.mxu0 %v5564_v21  ;;  %v474_v44 = vrot.slane %v472_v36, 7  ;;  %v4915_v29 = vld [vmem:[#allocation7 + $0x218] sm:$0xff]  }
  0xbd   : > { %1313 = vmatprep.mubr.bf16.mxu1 %v5552_v8  ;;  %4351 = vmatpush3.bf16.msra.mxu0 %v4892_v42  ;;  %v470_v42 = vor.u32 %v468_v34, %v467_v32  ;;  %v479_v50 = vshrl.u32 %v5681_v37, 16  ;;  %v482_v56 = vshll.u32 %v5681_v37, 16 }
  0xbe   : > { %4352 = vmatprep.subr.bf16.mxu0 %v4894_v52  ;;  %4387 = vmatpush3.bf16.msra.mxu1 %v4898_v43  ;;  %v5692_v43 = vsel %vm5540_vm2, 0, %v463_v35  ;;  %v5795_v35 = vsel %vm5686_vm5, %v539_v30, 0 }
  0xbf   : > { %4388 = vmatprep.subr.bf16.mxu1 %v4899_v54  ;;  %v481_v58 = vrot.slane %v479_v50, 7  ;;  %v544_v40 = vrot.slane %v482_v56, 1 }
  0xc1   : > { %4353 = vmatpush3.bf16.msra.mxu0 %v4894_v52  ;;  %v566_v52 = vsel %vm5686_vm5, %v5574_v25, 0  ;;  %v534_v25 = vrot.slane %v447_v38, 1  ;;  %v484_v38 = vor.u32 %v482_v56, %v481_v58  ;;  %v4921_v56 = vld [vmem:[#allocation7 + $0x1f0] sm:$0xff]   ;;  %v545_v58 = vor.u32 %v544_v40, %v479_v50 }
  0xc2   : > { %4354 = vmatprep.subr.bf16.mxu0 %v4896_v62  ;;  %4389 = vmatpush3.bf16.msra.mxu1 %v4899_v54  ;;  %v5705_v54 = vsel %vm5540_vm2, 0, %v470_v42  ;;  %v4922_v50 = vld [vmem:[#allocation7 + $0x1b0] sm:$0xff]  }
  0xc3   : > { %944 = vmatmul.mubr.bf16.gmra.mrb[12].mxu0 %v5641_v2  ;;  %4390 = vmatprep.subr.bf16.mxu1 %v4901_v0  ;;  %v574_v63 = vsel %vm5686_vm5, %v545_v58, 0 }
  0xc4   : > { %1314 = vmatmul.mubr.bf16.gmra.mrb[12].mxu1 %v5611_v46  ;;  %951 = vmatprep.mubr.bf16.mxu0 %v5607_v45 }
  0xc5   : > { %1321 = vmatprep.mubr.bf16.mxu1 %v5564_v21  ;;  %4355 = vmatpush3.bf16.msra.mxu0 %v4896_v62  ;;  %v477_v62 = vor.u32 %v475_v48, %v474_v44  ;;  %v4920_v44 = vld [vmem:[#allocation7 + $0x228] sm:$0xff]   ;;  %v543_v48 = vor.u32 %v542_v3, %v472_v36  ;;  %v546_v36 = vrot.slane %v489_v61, 1 }
  0xc6   : > { %4356 = vmatprep.subr.bf16.mxu0 %v4900_v7  ;;  %4391 = vmatpush3.bf16.msra.mxu1 %v4901_v0  ;;  %v536_v0 = vrot.slane %v454_v59, 1  ;;  %v535_v59 = vor.u32 %v534_v25, %v444_v33  ;;  %v4923_v25 = vld [vmem:[#allocation7 + $0x230] sm:$0xff]  }
  0xc7   : > { %4392 = vmatprep.subr.bf16.mxu1 %v4902_v13  ;;  %v5732_v4 = vsel %vm5540_vm2, 0, %v477_v62  ;;  %v573_v62 = vsel %vm5686_vm5, %v543_v48, 0  ;;  %v547_v61 = vor.u32 %v546_v36, %v486_v60  ;;  %v368_v60 = vld [vmem:[%s367_s21] sm:$0xff]  ;;  %v4941_v48 = vld [vmem:[#allocation9 + $0x158] sm:$0xff]  }
  0xc8   : > { %v537_v11 = vor.u32 %v536_v0, %v451_v53  ;;  %v5762_v33 = vsel %vm5686_vm5, %v535_v59, 0  ;;  %v4924_v0 = vld [vmem:[#allocation7 + $0x1f8] sm:$0xff]  }
  0xc9   : > { %4357 = vmatpush3.bf16.msra.mxu0 %v4900_v7  ;;  %v5743_v7 = vsel %vm5540_vm2, 0, %v484_v38  ;;  %v4926_v38 = vld [vmem:[#allocation7 + $0x238] sm:$0xff]   ;;  %v575_v9 = vsel %vm5686_vm5, %v547_v61, 0 }
  0xca   : > { %4393 = vmatpush3.bf16.msra.mxu1 %v4902_v13  ;;  %4008 = vmatprep.subr.bf16.mxu0 %v4903_v20  ;;  %v5771_v53 = vsel %vm5686_vm5, %v537_v11, 0  ;;  %v540_v13 = vrot.slane %v468_v34, 1  ;;  %v4909_v20 = vld [vmem:[#allocation7 + $0x190] sm:$0xff]   ;;  %v4917_v34 = vld [vmem:[#allocation7 + $0x220] sm:$0xff]   ;;  %v4925_v59 = vld [vmem:[#allocation7 + $0x1b8] sm:$0xff]   ;;  %v376_v11 = vstv %s375_s10  ;;  %s6534_s10 = sld [smem:[#allocation16_spill]] }
  0xcb   : > { %952 = vmatmul.mubr.bf16.gmra.mrb[16].mxu0 %v5665_v22  ;;  %4414 = vmatprep.subr.bf16.mxu1 %v5669_v27  ;;  %v377_v12 = vmul.f32 %v376_v11, %v368_v60 }
  0xcc   : > { %1322 = vmatmul.mubr.bf16.gmra.mrb[16].mxu1 %v5641_v2  ;;  %959 = vmatprep.mubr.bf16.mxu0 %v5631_v57  ;;  %v541_v32 = vor.u32 %v540_v13, %v465_v19  ;;  %v4918_v19 = vld [vmem:[#allocation7 + $0x1e8] sm:$0xff]  }
  0xcd   : > { %1329 = vmatprep.mubr.bf16.mxu1 %v5607_v45 }
  0xce   : > { %v5803_v42 = vsel %vm5686_vm5, %v541_v32, 0  ;;  %v4938_v32 = vld [vmem:[#allocation9 + $0x150] sm:$0xff]  }
  0xd0   : > { %p6536_p5 = scmp.ne.s32.totalorder %s6534_s10, 0 }
  0xd3   : > { %960 = vmatmul.mubr.bf16.gmra.mrb[20].mxu0 %v5692_v43 }
  0xd4   : > { %1330 = vmatmul.mubr.bf16.gmra.mrb[20].mxu1 %v5665_v22  ;;  %967 = vmatprep.mubr.bf16.mxu0 %v5648_v5 }
  0xd5   : > { %1337 = vmatprep.mubr.bf16.mxu1 %v5631_v57 }
  0xdb   : > { %968 = vmatmul.mubr.bf16.gmra.mrb[24].mxu0 %v5705_v54 }
  0xdc   : > { %1338 = vmatmul.mubr.bf16.gmra.mrb[24].mxu1 %v5692_v43  ;;  %975 = vmatprep.mubr.bf16.mxu0 %v5667_v24 }
  0xdd   : > { %1345 = vmatprep.mubr.bf16.mxu1 %v5648_v5 }
  0xe3   : > { %976 = vmatmul.mubr.bf16.gmra.mrb[28].mxu0 %v5732_v4 }
  0xe4   : > { %1346 = vmatmul.mubr.bf16.gmra.mrb[28].mxu1 %v5705_v54  ;;  %983 = vmatprep.mubr.bf16.mxu0 %v5681_v37 }
  0xe5   : > { %1353 = vmatprep.mubr.bf16.mxu1 %v5667_v24 }
  0xeb   : > { %984 = vmatmul.mubr.bf16.gmra.mrb[32].mxu0 %v5743_v7 }
  0xec   : > { %1354 = vmatmul.mubr.bf16.gmra.mrb[32].mxu1 %v5732_v4  ;;  %991 = vmatprep.mubr.bf16.mxu0 %v5698_v51 }
  0xed   : > { %1361 = vmatprep.mubr.bf16.mxu1 %v5681_v37 }
  0xf3   : > { %992 = vmatmul.mubr.bf16.gmra.mrb[36].mxu0 %v5767_v47 }
  0xf4   : > { %1362 = vmatmul.mubr.bf16.gmra.mrb[36].mxu1 %v5743_v7  ;;  %4358 = vmatprep.mubr.bf16.mxu0 %v566_v52 }
  0xf5   : > { %4394 = vmatprep.mubr.bf16.mxu1 %v565_v10  ;;  %v369_v10 = vld [vmem:[%s367_s21 + $0x8] sm:$0xff] }
  0xfb   : > { %4359 = vmatmul.mubr.bf16.vlgmr.msra.gmra.mrb[40].mxu0 %v5737_v6 }
  0xfc   : > { %4395 = vmatmul.mubr.bf16.vlgmr.msra.gmra.mrb[40].mxu1 %v566_v52  ;;  %4009 = vmatpush3.bf16.msra.mxu0 %v4904_v55  ;;  %v4919_v52 = vld [vmem:[#allocation7 + $0x1a8] sm:$0xff]  }
  0xfd   : > { %4010 = vmatprep.subr.bf16.mxu0 %v4905_v15  ;;  %4362 = vmatprep.mubr.bf16.mxu0 %v5758_v23 }
  0xfe   : > { %4398 = vmatprep.mubr.bf16.mxu1 %v5737_v6  ;;  %4415 = vmatpush3.bf16.msra.mxu1 %v5669_v27  ;;  %v4914_v27 = vld [vmem:[#allocation7 + $0x1e0] sm:$0xff]  }
  0xff   : > { %4416 = vmatprep.subr.bf16.mxu1 %v4910_v16 }
 0x100   : > { %4011 = vmatpush3.bf16.msra.mxu0 %v4906_v17  ;;  %v4935_v17 = vld [vmem:[#allocation9 + $0x148] sm:$0xff]  }
 0x101   : > { %4012 = vmatprep.subr.bf16.mxu0 %v4908_v14 }
 0x102   : > { %4417 = vmatpush3.bf16.msra.mxu1 %v4910_v16  ;;  %v4934_v16 = vld [vmem:[#allocation9 + $0x118] sm:$0xff]  }
 0x103   : > { %4363 = vmatmul.mubr.bf16.gmra.mrb[44].mxu0 %v5762_v33  ;;  %4418 = vmatprep.subr.bf16.mxu1 %v4913_v18 }
 0x104   : > { %4399 = vmatmul.mubr.bf16.gmra.mrb[44].mxu1 %v5758_v23  ;;  %4013 = vmatpush3.bf16.msra.mxu0 %v4909_v20 }
 0x105   : > { %4366 = vmatprep.mubr.bf16.mxu0 %v5771_v53  ;;  %4402 = vmatprep.mubr.bf16.mxu1 %v5762_v33 }
 0x106   : > { %4014 = vmatprep.subr.bf16.mxu0 %v4911_v28  ;;  %4419 = vmatpush3.bf16.msra.mxu1 %v4913_v18  ;;  %v4936_v28 = vld [vmem:[#allocation9 + $0xd8] sm:$0xff]  }
 0x107   : > { %4420 = vmatprep.subr.bf16.mxu1 %v4915_v29 }
 0x108   : > { %4015 = vmatpush3.bf16.msra.mxu0 %v4912_v31 }
 0x109   : > { %4016 = vmatprep.subr.bf16.mxu0 %v4914_v27  ;;  %v4937_v27 = vld [vmem:[#allocation9 + $0x120] sm:$0xff]  }
 0x10a   : > { %4421 = vmatpush3.bf16.msra.mxu1 %v4915_v29 }
 0x10b   : > { %4367 = vmatmul.mubr.bf16.gmra.mrb[48].mxu0 %v5795_v35  ;;  %4422 = vmatprep.subr.bf16.mxu1 %v4917_v34 }
 0x10c   : > { %4403 = vmatmul.mubr.bf16.gmra.mrb[48].mxu1 %v5771_v53  ;;  %4017 = vmatpush3.bf16.msra.mxu0 %v4916_v39 }
 0x10d   : > { %4370 = vmatprep.mubr.bf16.mxu0 %v5803_v42  ;;  %4406 = vmatprep.mubr.bf16.mxu1 %v5795_v35 }
 0x10e   : > { %4018 = vmatprep.subr.bf16.mxu0 %v4918_v19  ;;  %4423 = vmatpush3.bf16.msra.mxu1 %v4917_v34  ;;  %v4939_v34 = vld [vmem:[#allocation9 + $0xe0] sm:$0xff]  }
 0x10f   : > { %4424 = vmatprep.subr.bf16.mxu1 %v4920_v44 }
 0x110   : > { %4019 = vmatpush3.bf16.msra.mxu0 %v4919_v52 }
 0x111   : > { %4020 = vmatprep.subr.bf16.mxu0 %v4921_v56 }
 0x112   : > { %4425 = vmatpush3.bf16.msra.mxu1 %v4920_v44  ;;  %v4940_v44 = vld [vmem:[#allocation9 + $0x128] sm:$0xff]  }
 0x113   : > { %4371 = vmatmul.mubr.bf16.gmra.mrb[52].mxu0 %v573_v62  ;;  %4426 = vmatprep.subr.bf16.mxu1 %v4923_v25 }
 0x114   : > { %4407 = vmatmul.mubr.bf16.gmra.mrb[52].mxu1 %v5803_v42  ;;  %4374 = vmatprep.mubr.bf16.mxu0 %v574_v63 }
 0x115   : > { %4410 = vmatprep.mubr.bf16.mxu1 %v573_v62  ;;  %4021 = vmatpush3.bf16.msra.mxu0 %v4922_v50  ;;  %v4943_v50 = vld [vmem:[#allocation9 + $0x130] sm:$0xff]  }
 0x116   : > { %4427 = vmatpush3.bf16.msra.mxu1 %v4923_v25  ;;  %4022 = vmatprep.subr.bf16.mxu0 %v4924_v0  ;;  %v4942_v25 = vld [vmem:[#allocation9 + $0xe8] sm:$0xff]   ;;  %v4944_v0 = vld [vmem:[#allocation9 + $0x160] sm:$0xff]  }
 0x117   : > { %4428 = vmatprep.subr.bf16.mxu1 %v4926_v38 }
 0x119   : > { %4023 = vmatpush3.bf16.msra.mxu0 %v4925_v59 }
 0x11a   : > { %4429 = vmatpush3.bf16.msra.mxu1 %v4926_v38  ;;  %v4945_v38 = vld [vmem:[#allocation9 + $0xf0] sm:$0xff]  }
 0x11b   : > { %4375 = vmatmul.mubr.bf16.gmra.mrb[56].mxu0 %v575_v9 }
 0x11c   : > { %4411 = vmatmul.mubr.bf16.gmra.mrb[56].mxu1 %v574_v63  ;;  %1738 = vmatprep.mubr.bf16.mxu0 %v5530_v49  ;;  %v378_v49 = vmul.f32 %v376_v11, %v369_v10 }
 0x11d   : > { %4430 = vmatprep.mubr.bf16.mxu1 %v5737_v6 }
 0x11e   : > { %v402_v6 = vmax.f32 %v378_v49, 0.0  ;;  %v4947_v49 = vld [vmem:[#allocation9 + $0x168] sm:$0xff]  }
 0x123   : > { %1739 = vmatmul.mubr.bf16.vlgmr.msra.gmra.mrb[60].mxu0 %v5578_v26  ;;  %v401_v26 = vmax.f32 %v377_v12, 0.0  ;;  %v4946_v12 = vld [vmem:[#allocation9 + $0x138] sm:$0xff]  }
 0x124   : > { %4431 = vmatmul.mubr.bf16.vlgmr.msra.gmra.mrb[40].mxu1 %v5758_v23  ;;  %1746 = vmatprep.mubr.bf16.mxu0 %v5552_v8 }
 0x125   : > { %4434 = vmatprep.mubr.bf16.mxu1 %v5762_v33  ;;  %v414_v23 = vpack.c.bf16 %v402_v6, %v401_v26 }
 0x127   : > { %v496_v8 = vshll.u32 %v414_v23, 16  ;;  %v493_v33 = vshrl.u32 %v414_v23, 16 }
 0x129   : > { %v548_v13 = vrot.slane %v496_v8, 1 }
 0x12b   : > { %1747 = vmatmul.mubr.bf16.gmra.mrb[64].mxu0 %v5611_v46 }
 0x12c   : > { %4435 = vmatmul.mubr.bf16.gmra.mrb[44].mxu1 %v5771_v53  ;;  %1754 = vmatprep.mubr.bf16.mxu0 %v5564_v21  ;;  %v549_v21 = vor.u32 %v548_v13, %v493_v33 }
 0x12d   : > { %4438 = vmatprep.mubr.bf16.mxu1 %v5795_v35 }
 0x12e   : > { %v576_v46 = vsel %vm5686_vm5, %v549_v21, 0 }
 0x133   : > { %1755 = vmatmul.mubr.bf16.gmra.mrb[68].mxu0 %v5641_v2 }
 0x134   : > { %4439 = vmatmul.mubr.bf16.gmra.mrb[48].mxu1 %v5803_v42  ;;  %1762 = vmatprep.mubr.bf16.mxu0 %v5607_v45  ;;  %v495_v45 = vrot.slane %v493_v33, 7 }
 0x135   : > { %4442 = vmatprep.mubr.bf16.mxu1 %v573_v62 }
 0x13b   : > { %1763 = vmatmul.mubr.bf16.gmra.mrb[72].mxu0 %v5665_v22  ;;  %v4928_v22 = vld [vmem:[#allocation9 + $0xc0] sm:$0xff]  }
 0x13c   : > { %4443 = vmatmul.mubr.bf16.gmra.mrb[52].mxu1 %v574_v63  ;;  %1770 = vmatprep.mubr.bf16.mxu0 %v5631_v57  ;;  %v498_v57 = vor.u32 %v496_v8, %v495_v45  ;;  %v4948_v8 = vld [vmem:[#allocation9 + $0xf8] sm:$0xff]  }
 0x13d   : > { %4446 = vmatprep.mubr.bf16.mxu1 %v575_v9 }
 0x13e   : > { %v525_v2 = vsel %vm5540_vm2, 0, %v498_v57 }
 0x143   : > { %1771 = vmatmul.mubr.bf16.gmra.mrb[76].mxu0 %v5692_v43  ;;  %v4930_v43 = vld [vmem:[#allocation9 + $0xc8] sm:$0xff]  }
 0x144   : > { %4447 = vmatmul.mubr.bf16.gmra.mrb[56].mxu1 %v576_v46  ;;  %1778 = vmatprep.mubr.bf16.mxu0 %v5648_v5  ;;  %v4927_v5 = vld [vmem:[#allocation9 + $0x100] sm:$0xff]   ;;  %v4949_v46 = vld [vmem:[#allocation9 + $0x170] sm:$0xff]  }
 0x145   : > { %4102 = vmatprep.subr.bf16.mxu0 %v4927_v5 }
 0x146   : > { %4103 = vmatpush3.bf16.msra.mxu0 %v4928_v22 }
 0x14b   : > { %1779 = vmatmul.mubr.bf16.gmra.mrb[80].mxu0 %v5705_v54  ;;  %v4932_v54 = vld [vmem:[#allocation9 + $0x140] sm:$0xff]  }
 0x14c   : > { %1786 = vmatprep.mubr.bf16.mxu0 %v5667_v24  ;;  %v4929_v24 = vld [vmem:[#allocation9 + $0x108] sm:$0xff]   ;;  %4450 = vmatprep.subr.bf16.mxu1 %v4932_v54 }
 0x14d   : > { %4104 = vmatprep.subr.bf16.mxu0 %v4929_v24  ;;  %4451 = vmatpush3.bf16.msra.mxu1 %v4932_v54 }
 0x14e   : > { %4105 = vmatpush3.bf16.msra.mxu0 %v4930_v43  ;;  %4452 = vmatprep.subr.bf16.mxu1 %v4935_v17  ;;  %v4950_v43 = vld [vmem:[#allocation9 + $0x178] sm:$0xff]  }
 0x151   : > { %4453 = vmatpush3.bf16.msra.mxu1 %v4935_v17 }
 0x152   : > { %4454 = vmatprep.subr.bf16.mxu1 %v4938_v32 }
 0x153   : > { %1787 = vmatmul.mubr.bf16.gmra.mrb[84].mxu0 %v5732_v4 }
 0x154   : > { %1794 = vmatprep.mubr.bf16.mxu0 %v5681_v37  ;;  %v4931_v37 = vld [vmem:[#allocation9 + $0x110] sm:$0xff]  }
 0x155   : > { %4106 = vmatprep.subr.bf16.mxu0 %v4931_v37  ;;  %4455 = vmatpush3.bf16.msra.mxu1 %v4938_v32 }
 0x156   : > { %4456 = vmatprep.subr.bf16.mxu1 %v4941_v48 }
 0x159   : > { %4457 = vmatpush3.bf16.msra.mxu1 %v4941_v48 }
 0x15a   : > { %4458 = vmatprep.subr.bf16.mxu1 %v4944_v0 }
 0x15b   : > { %1795 = vmatmul.mubr.bf16.gmra.mrb[88].mxu0 %v5743_v7 }
 0x15c   : > { %1802 = vmatprep.mubr.bf16.mxu0 %v5698_v51  ;;  %v4933_v51 = vld [vmem:[#allocation9 + $0xd0] sm:$0xff]  }
 0x15d   : > { %4107 = vmatpush3.bf16.msra.mxu0 %v4933_v51  ;;  %4459 = vmatpush3.bf16.msra.mxu1 %v4944_v0 }
 0x15e   : > { %4108 = vmatprep.subr.bf16.mxu0 %v4934_v16  ;;  %4460 = vmatprep.subr.bf16.mxu1 %v4947_v49 }
 0x161   : > { %4109 = vmatpush3.bf16.msra.mxu0 %v4936_v28  ;;  %4461 = vmatpush3.bf16.msra.mxu1 %v4947_v49 }
 0x162   : > { %4110 = vmatprep.subr.bf16.mxu0 %v4937_v27  ;;  %4462 = vmatprep.subr.bf16.mxu1 %v4949_v46 }
 0x163   : > { %1803 = vmatmul.mubr.bf16.gmra.mrb[92].mxu0 %v5767_v47 }
 0x164   : > { %1810 = vmatprep.mubr.bf16.mxu0 %v414_v23 }
 0x165   : > { %4111 = vmatpush3.bf16.msra.mxu0 %v4939_v34  ;;  %4463 = vmatpush3.bf16.msra.mxu1 %v4949_v46  ;;  %v4951_v46 = vld [vmem:[#allocation9 + $0x40] sm:$0xff]  }
 0x166   : > { %4112 = vmatprep.subr.bf16.mxu0 %v4940_v44  ;;  %4464 = vmatprep.subr.bf16.mxu1 %v4950_v43 }
 0x169   : > { %4113 = vmatpush3.bf16.msra.mxu0 %v4942_v25  ;;  %4465 = vmatpush3.bf16.msra.mxu1 %v4950_v43 }
 0x16a   : > { %4114 = vmatprep.subr.bf16.mxu0 %v4943_v50 }
 0x16b   : > { %1811 = vmatmul.mubr.bf16.gmra.mrb[96].mxu0 %v525_v2 }
 0x16d   : > { %4115 = vmatpush3.bf16.msra.mxu0 %v4945_v38 }
 0x16e   : > { %4116 = vmatprep.subr.bf16.mxu0 %v4946_v12 }
 0x171   : > { %4117 = vmatpush3.bf16.msra.mxu0 %v4948_v8 }
 0x172   : > { %4182 = vmatprep.subr.bf16.mxu0 %v4951_v46 }
 0x17e   : > { %v3836_v4 = vpop.f32.mrb[0].mxu0 }
 0x17f   : > { %v3837_v7 = vpop.f32.mrb[1].mxu0  ;;  %v3930_v47 = vpop.f32.mrb[0].mxu1 }
 0x180   : > { %v5861_v53 = vadd.f32 %v3837_v7, %v3836_v4  ;;  %v3839_v55 = vpop.f32.mrb[2].mxu0  ;;  %v3931_v15 = vpop.f32.mrb[1].mxu1 }
 0x181   : > { %v3840_v14 = vpop.f32.mrb[3].mxu0  ;;  %v5863_v18 = vadd.f32 %v3931_v15, %v3930_v47  ;;  %v3933_v20 = vpop.f32.mrb[2].mxu1 }
 0x182   : > { %v5865_v29 = vadd.f32 %v3840_v14, %v3839_v55  ;;  %v3934_v30 = vpop.f32.mrb[3].mxu1 }
 0x183   : > { %v5867_v31 = vadd.f32 %v3934_v30, %v3933_v20 }
 0x186   : > { %v3842_v35 = vpop.f32.mrb[4].mxu0 }
 0x187   : > { %v3843_v39 = vpop.f32.mrb[5].mxu0  ;;  %v3936_v3 = vpop.f32.mrb[4].mxu1 }
 0x188   : > { %v5869_v40 = vadd.f32 %v3843_v39, %v3842_v35  ;;  %v3845_v42 = vpop.f32.mrb[6].mxu0  ;;  %v3937_v19 = vpop.f32.mrb[5].mxu1 }
 0x189   : > { %v3846_v52 = vpop.f32.mrb[7].mxu0  ;;  %v5871_v56 = vadd.f32 %v3937_v19, %v3936_v3  ;;  %v3939_v58 = vpop.f32.mrb[6].mxu1 }
 0x18a   : > { %v5873_v62 = vadd.f32 %v3846_v52, %v3845_v42  ;;  %v3940_v36 = vpop.f32.mrb[7].mxu1 }
 0x18b   : > { %v5875_v63 = vadd.f32 %v3940_v36, %v3939_v58 }
 0x18e   : > { %v3848_v61 = vpop.f32.mrb[8].mxu0 }
 0x18f   : > { %v3849_v59 = vpop.f32.mrb[9].mxu0  ;;  %v3942_v9 = vpop.f32.mrb[8].mxu1 }
 0x190   : > { %v5877_v60 = vadd.f32 %v3849_v59, %v3848_v61  ;;  %v3851_v10 = vpop.f32.mrb[10].mxu0  ;;  %v3943_v11 = vpop.f32.mrb[9].mxu1 }
 0x191   : > { %v3852_v26 = vpop.f32.mrb[11].mxu0  ;;  %v5879_v6 = vadd.f32 %v3943_v11, %v3942_v9  ;;  %v3945_v23 = vpop.f32.mrb[10].mxu1 }
 0x192   : > { %v5881_v33 = vadd.f32 %v3852_v26, %v3851_v10  ;;  %v3946_v13 = vpop.f32.mrb[11].mxu1 }
 0x193   : > { %v5883_v21 = vadd.f32 %v3946_v13, %v3945_v23 }
 0x196   : > { %v3854_v45 = vpop.f32.mrb[12].mxu0 }
 0x197   : > { %v3855_v57 = vpop.f32.mrb[13].mxu0  ;;  %v3948_v2 = vpop.f32.mrb[12].mxu1 }
 0x198   : > { %v5885_v5 = vadd.f32 %v3855_v57, %v3854_v45  ;;  %v3857_v22 = vpop.f32.mrb[14].mxu0  ;;  %v3949_v24 = vpop.f32.mrb[13].mxu1  ;;  %v5917_v45 = vld [vmem:[#allocation9 + $0x80] sm:$0xff]  }
 0x199   : > { %v3858_v37 = vpop.f32.mrb[15].mxu0  ;;  %v5887_v54 = vadd.f32 %v3949_v24, %v3948_v2  ;;  %v3951_v51 = vpop.f32.mrb[14].mxu1  ;;  %4482 = vmatprep.subr.bf16.mxu1 %v5917_v45 }
 0x19a   : > { %v5889_v4 = vadd.f32 %v3858_v37, %v3857_v22  ;;  %v3952_v7 = vpop.f32.mrb[15].mxu1 }
 0x19b   : > { %v5891_v47 = vadd.f32 %v3952_v7, %v3951_v51 }
 0x19e   : > { %v3860_v55 = vpop.f32.mrb[16].mxu0 }
 0x19f   : > { %v3861_v15 = vpop.f32.mrb[17].mxu0  ;;  %v3954_v16 = vpop.f32.mrb[16].mxu1 }
 0x1a0   : > { %v5893_v17 = vadd.f32 %v3861_v15, %v3860_v55  ;;  %v3863_v14 = vpop.f32.mrb[18].mxu0  ;;  %v3955_v20 = vpop.f32.mrb[17].mxu1 }
 0x1a1   : > { %v3864_v28 = vpop.f32.mrb[19].mxu0  ;;  %v5895_v30 = vadd.f32 %v3955_v20, %v3954_v16  ;;  %v3957_v27 = vpop.f32.mrb[18].mxu1 }
 0x1a2   : > { %v5897_v32 = vadd.f32 %v3864_v28, %v3863_v14  ;;  %v3958_v34 = vpop.f32.mrb[19].mxu1 }
 0x1a3   : > { %v5899_v35 = vadd.f32 %v3958_v34, %v3957_v27 }
 0x1a6   : > { %v3866_v39 = vpop.f32.mrb[20].mxu0 }
 0x1a7   : > { %v3867_v3 = vpop.f32.mrb[21].mxu0  ;;  %v3960_v42 = vpop.f32.mrb[20].mxu1 }
 0x1a8   : > { %v5901_v19 = vadd.f32 %v3867_v3, %v3866_v39  ;;  %v3869_v44 = vpop.f32.mrb[22].mxu0  ;;  %v3961_v48 = vpop.f32.mrb[21].mxu1 }
 0x1a9   : > { %v3870_v52 = vpop.f32.mrb[23].mxu0  ;;  %v5903_v58 = vadd.f32 %v3961_v48, %v3960_v42  ;;  %v3963_v25 = vpop.f32.mrb[22].mxu1 }
 0x1aa   : > { %v5905_v36 = vadd.f32 %v3870_v52, %v3869_v44  ;;  %v3964_v50 = vpop.f32.mrb[23].mxu1 }
 0x1ab   : > { %v5907_v0 = vadd.f32 %v3964_v50, %v3963_v25 }
 0x1ae   : > { %v3872_v38 = vpop.f32.mrb[24].mxu0 }
 0x1af   : > { %v3873_v61 = vpop.f32.mrb[25].mxu0  ;;  %v3966_v59 = vpop.f32.mrb[24].mxu1 }
 0x1b0   : > { %v5909_v9 = vadd.f32 %v3873_v61, %v3872_v38  ;;  %v3875_v10 = vpop.f32.mrb[26].mxu0  ;;  %v3967_v11 = vpop.f32.mrb[25].mxu1 }
 0x1b1   : > { %v3876_v12 = vpop.f32.mrb[27].mxu0  ;;  %v5911_v49 = vadd.f32 %v3967_v11, %v3966_v59  ;;  %v3969_v26 = vpop.f32.mrb[26].mxu1 }
 0x1b2   : > { %v5913_v23 = vadd.f32 %v3876_v12, %v3875_v10  ;;  %v3970_v8 = vpop.f32.mrb[27].mxu1 }
 0x1b3   : > { %v5915_v13 = vadd.f32 %v3970_v8, %v3969_v26 }
 0x1b6   : > { %v3878_v57 = vpop.f32.mrb[28].mxu0 }
 0x1b7   : > { %v3879_v2 = vpop.f32.mrb[29].mxu0  ;;  %v3972_v22 = vpop.f32.mrb[28].mxu1 }
 0x1b8   : > { %v5920_v24 = vadd.f32 %v3879_v2, %v3878_v57  ;;  %v3881_v43 = vpop.f32.mrb[30].mxu0  ;;  %v3973_v37 = vpop.f32.mrb[29].mxu1 }
 0x1b9   : > { %v3882_v51 = vpop.f32.mrb[31].mxu0  ;;  %v5922_v7 = vadd.f32 %v3973_v37, %v3972_v22  ;;  %v3975_v55 = vpop.f32.mrb[30].mxu1 }
 0x1ba   : > { %v5924_v15 = vadd.f32 %v3882_v51, %v3881_v43  ;;  %v3976_v16 = vpop.f32.mrb[31].mxu1 }
 0x1bb   : > { %v5926_v14 = vadd.f32 %v3976_v16, %v3975_v55 }
 0x1be   : > { %v3884_v20 = vpop.f32.mrb[32].mxu0 }
 0x1bf   : > { %v3885_v28 = vpop.f32.mrb[33].mxu0  ;;  %v3978_v27 = vpop.f32.mrb[32].mxu1 }
 0x1c0   : > { %v5928_v34 = vadd.f32 %v3885_v28, %v3884_v20  ;;  %v3887_v39 = vpop.f32.mrb[34].mxu0  ;;  %v3979_v3 = vpop.f32.mrb[33].mxu1 }
 0x1c1   : > { %v3888_v42 = vpop.f32.mrb[35].mxu0  ;;  %v5930_v44 = vadd.f32 %v3979_v3, %v3978_v27  ;;  %v3981_v48 = vpop.f32.mrb[34].mxu1 }
 0x1c2   : > { %v5932_v52 = vadd.f32 %v3888_v42, %v3887_v39  ;;  %v3982_v25 = vpop.f32.mrb[35].mxu1 }
 0x1c3   : > { %v5934_v50 = vadd.f32 %v3982_v25, %v3981_v48 }
 0x1c6   : > { %v3890_v38 = vpop.f32.mrb[36].mxu0 }
 0x1c7   : > { %v3891_v61 = vpop.f32.mrb[37].mxu0  ;;  %v3984_v59 = vpop.f32.mrb[36].mxu1 }
 0x1c8   : > { %v3892_v10 = vadd.f32 %v3891_v61, %v3890_v38  ;;  %v3893_v11 = vpop.f32.mrb[38].mxu0  ;;  %v3985_v12 = vpop.f32.mrb[37].mxu1 }
 0x1c9   : > { %v3894_v26 = vpop.f32.mrb[39].mxu0  ;;  %v3986_v8 = vadd.f32 %v3985_v12, %v3984_v59  ;;  %v3987_v46 = vpop.f32.mrb[38].mxu1 }
 0x1ca   : > { %v3895_v57 = vadd.f32 %v3894_v26, %v3893_v11  ;;  %v3988_v2 = vpop.f32.mrb[39].mxu1 }
 0x1cb   : > { %v3989_v22 = vadd.f32 %v3988_v2, %v3987_v46 }
 0x1ce   : > { %v4360_v43 = vpop.f32.mrb[40].mxu0 }
 0x1cf   : > { %v1043_v37 = vadd.f32 %v4360_v43, %v5869_v40  ;;  %v1034_v51 = vpop.f32.mrb[41].mxu0 }
 0x1d0   : > { %v1035_v55 = vadd.f32 %v5861_v53, %v1034_v51  ;;  %v4361_v16 = vpop.f32.mrb[42].mxu0 }
 0x1d1   : > { %v5939_v20 = vadd.f32 %v5871_v56, %v1043_v37  ;;  %v1046_v28 = vadd.f32 %v4361_v16, %v5873_v62  ;;  %v1037_v27 = vpop.f32.mrb[43].mxu0 }
 0x1d2   : > { %v1292_v39 = vadd.f32 %v5863_v18, %v1035_v55  ;;  %v1038_v3 = vadd.f32 %v5865_v29, %v1037_v27 }
 0x1d3   : > { %v5945_v42 = vadd.f32 %v5875_v63, %v1046_v28 }
 0x1d4   : > { %v5948_v48 = vadd.f32 %v5867_v31, %v1038_v3 }
 0x1d6   : > { %v4364_v40 = vpop.f32.mrb[44].mxu0 }
 0x1d7   : > { %v1059_v53 = vadd.f32 %v4364_v40, %v5885_v5  ;;  %v1050_v25 = vpop.f32.mrb[45].mxu0 }
 0x1d8   : > { %v1051_v56 = vadd.f32 %v5877_v60, %v1050_v25  ;;  %v4365_v38 = vpop.f32.mrb[46].mxu0 }
 0x1d9   : > { %v5953_v62 = vadd.f32 %v5887_v54, %v1059_v53  ;;  %v1062_v18 = vadd.f32 %v4365_v38, %v5889_v4  ;;  %v1053_v61 = vpop.f32.mrb[47].mxu0 }
 0x1da   : > { %v5957_v29 = vadd.f32 %v5879_v6, %v1051_v56  ;;  %v1054_v63 = vadd.f32 %v5881_v33, %v1053_v61 }
 0x1db   : > { %v5961_v31 = vadd.f32 %v5891_v47, %v1062_v18 }
 0x1dc   : > { %v5964_v5 = vadd.f32 %v5883_v21, %v1054_v63 }
 0x1de   : > { %v4368_v59 = vpop.f32.mrb[48].mxu0 }
 0x1df   : > { %v1075_v60 = vadd.f32 %v4368_v59, %v5901_v19  ;;  %v1066_v11 = vpop.f32.mrb[49].mxu0 }
 0x1e0   : > { %v1067_v54 = vadd.f32 %v5893_v17, %v1066_v11  ;;  %v4369_v12 = vpop.f32.mrb[50].mxu0 }
 0x1e1   : > { %v5969_v4 = vadd.f32 %v5903_v58, %v1075_v60  ;;  %v1078_v6 = vadd.f32 %v4369_v12, %v5905_v36  ;;  %v1069_v26 = vpop.f32.mrb[51].mxu0 }
 0x1e2   : > { %v5973_v33 = vadd.f32 %v5895_v30, %v1067_v54  ;;  %v1070_v47 = vadd.f32 %v5897_v32, %v1069_v26  ;;  %v2003_v26 = vstv %s2000_s29  ;;  %s5085_s29 = scalar_lea.vmem %s6419_s25, 2048 }
 0x1e3   : > { %v5977_v21 = vadd.f32 %v5907_v0, %v1078_v6  ;;  %p5086_p7 = scmp.ne.s32.totalorder %s6419_s25, %s5085_s29 }
 0x1e4   : > { %v5980_v19 = vadd.f32 %v5899_v35, %v1070_v47 }
 0x1e5   : > { %p5087_p8 = pnand %p5086_p7, %p6536_p5 }
 0x1e6   : > { %v4372_v46 = vpop.f32.mrb[52].mxu0 }
 0x1e7   : > { %v1091_v17 = vadd.f32 %v4372_v46, %v5920_v24  ;;  %v1082_v2 = vpop.f32.mrb[53].mxu0  ;;  %p5088_p12 = pneg %p5087_p8 }
 0x1e8   : > { %v1083_v58 = vadd.f32 %v5909_v9, %v1082_v2  ;;  %v4373_v43 = vpop.f32.mrb[54].mxu0 }
 0x1e9   : > { %v5985_v36 = vadd.f32 %v5922_v7, %v1091_v17  ;;  %v1094_v30 = vadd.f32 %v4373_v43, %v5924_v15  ;;  %v1085_v37 = vpop.f32.mrb[55].mxu0 }
 0x1ea   : > { %v5989_v32 = vadd.f32 %v5911_v49, %v1083_v58  ;;  %v1086_v0 = vadd.f32 %v5913_v23, %v1085_v37 }
 0x1eb   : > { %v5993_v35 = vadd.f32 %v5926_v14, %v1094_v30 }
 0x1ec   : > { %v5996_v24 = vadd.f32 %v5915_v13, %v1086_v0 }
 0x1ee   : > { %v4376_v51 = vpop.f32.mrb[56].mxu0 }
 0x1ef   : > { %v1107_v9 = vadd.f32 %v4376_v51, %v3892_v10  ;;  %v1098_v55 = vpop.f32.mrb[57].mxu0 }
 0x1f0   : > { %v1099_v7 = vadd.f32 %v5928_v34, %v1098_v55  ;;  %v4377_v16 = vpop.f32.mrb[58].mxu0 }
 0x1f1   : > { %v5999_v15 = vadd.f32 %v3986_v8, %v1107_v9  ;;  %v1110_v28 = vadd.f32 %v4377_v16, %v3895_v57  ;;  %v1101_v49 = vpop.f32.mrb[59].mxu0 }
 0x1f2   : > { %v6002_v27 = vadd.f32 %v5930_v44, %v1099_v7  ;;  %v1102_v23 = vadd.f32 %v5932_v52, %v1101_v49  ;;  %v6015_v52 = vld [vmem:[%s6489_s2] ss:$0 sm:$0xff] }
 0x1f3   : > { %v6005_v14 = vadd.f32 %v3989_v22, %v1110_v28 }
 0x1f4   : > { %v6008_v13 = vadd.f32 %v5934_v50, %v1102_v23 }
 0x1f6   : > { %v4024_v10 = vpop.f32.mrb[60].mxu0 }
 0x1f7   : > { %v4432_v3 = vpop.f32.mrb[40].mxu1  ;;  %v4025_v40 = vpop.f32.mrb[61].mxu0 }
 0x1f8   : > { %v4026_v53 = vadd.f32 %v4025_v40, %v4024_v10  ;;  %v1853_v34 = vpop.f32.mrb[41].mxu1  ;;  %v4027_v25 = vpop.f32.mrb[62].mxu0 }
 0x1f9   : > { %v4433_v8 = vpop.f32.mrb[42].mxu1  ;;  %v4028_v57 = vpop.f32.mrb[63].mxu0 }
 0x1fa   : > { %v4552_v56 = vadd.f32 %v4026_v53, %v1292_v39  ;;  %v4029_v44 = vadd.f32 %v4028_v57, %v4027_v25  ;;  %v1856_v38 = vpop.f32.mrb[43].mxu1 }
 0x1fc   : > { %v4553_v50 = vadd.f32 %v4552_v56, %v1853_v34  ;;  %v4560_v22 = vadd.f32 %v4029_v44, %v5948_v48 }
 0x1fe   : > { %v1959_v18 = vadd.f32 %v4553_v50, %v6015_v52  ;;  %v4561_v61 = vadd.f32 %v4560_v22, %v1856_v38  ;;  %v4030_v63 = vpop.f32.mrb[64].mxu0 }
 0x1ff   : > { %v6019_v59 = vpop.f32.mrb[44].mxu1  ;;  %v4031_v60 = vpop.f32.mrb[65].mxu0 }
 0x200   : > { %v1979_v11 = vmax.f32 %v1959_v18, 0.0  ;;  %v1960_v39 = vadd.f32 %v4561_v61, %v6015_v52  ;;  %v4032_v54 = vadd.f32 %v4031_v60, %v4030_v63  ;;  %v1869_v12 = vpop.f32.mrb[45].mxu1  ;;  %v4033_v6 = vpop.f32.mrb[66].mxu0 }
 0x201   : > { %v4437_v47 = vpop.f32.mrb[46].mxu1  ;;  %v4034_v46 = vpop.f32.mrb[67].mxu0 }
 0x202   : > { %v1980_v17 = vmax.f32 %v1960_v39, 0.0  ;;  %v4548_v48 = vadd.f32 %v4032_v54, %v5939_v20  ;;  %v4035_v2 = vadd.f32 %v4034_v46, %v4033_v6  ;;  %v1872_v58 = vpop.f32.mrb[47].mxu1  ;;  %v2004_v43 = vmul.f32 %v2003_v26, %v1979_v11 }
 0x204   : > { %v2005_v30 = vmul.f32 %v2003_v26, %v1980_v17  ;;  %v4549_v37 = vadd.f32 %v4548_v48, %v4432_v3  ;;  %v4556_v0 = vadd.f32 %v4035_v2, %v5945_v42 }
 0x206   : > { %v1961_v51 = vadd.f32 %v4549_v37, %v6015_v52  ;;  %v4557_v9 = vadd.f32 %v4556_v0, %v4433_v8  ;;  %v4036_v55 = vpop.f32.mrb[68].mxu0  ;;  %v6025_v7 = vpack.c.bf16 %v2005_v30, %v2004_v43  ;;  %v4953_v37 = vld [vmem:[#allocation9] sm:$0xff]  }
 0x207   : > { %v6027_v16 = vpop.f32.mrb[48].mxu1  ;;  %v4037_v28 = vpop.f32.mrb[69].mxu0 }
 0x208   : > { %v1962_v49 = vadd.f32 %v4557_v9, %v6015_v52  ;;  %v4038_v23 = vadd.f32 %v4037_v28, %v4036_v55  ;;  %v6030_v20 = vpop.f32.mrb[49].mxu1  ;;  %v4039_v10 = vpop.f32.mrb[70].mxu0  ;;  %v1981_v53 = vmax.f32 %v1961_v51, 0.0  ;;  %v4954_v28 = vld [vmem:[#allocation9 + $0x48] sm:$0xff]  }
 0x209   : > { %v6032_v40 = vpop.f32.mrb[50].mxu1  ;;  %v4040_v3 = vpop.f32.mrb[71].mxu0 }
 0x20a   : > { %v1982_v42 = vmax.f32 %v1962_v49, 0.0  ;;  %v4568_v34 = vadd.f32 %v4038_v23, %v5957_v29  ;;  %v4041_v25 = vadd.f32 %v4040_v3, %v4039_v10  ;;  %v6035_v8 = vpop.f32.mrb[51].mxu1 }
 0x20c   : > { %v4569_v57 = vadd.f32 %v4568_v34, %v1869_v12  ;;  %v4576_v56 = vadd.f32 %v4041_v25, %v5964_v5  ;;  %v6038_v44 = vpack.c.bf16 %v1982_v42, %v1981_v53  ;;  %v4956_v42 = vld [vmem:[#allocation9 + $0x8] sm:$0xff]  }
 0x20e   : > { %v1963_v38 = vadd.f32 %v4569_v57, %v6015_v52  ;;  %v4577_v50 = vadd.f32 %v4576_v56, %v1872_v58  ;;  %v4042_v22 = vpop.f32.mrb[72].mxu0  ;;  %2479 = vmatprep.mubr.bf16.mxu0 %v6038_v44  ;;  %v2027_v18 = vshrl.u32 %v6038_v44, 16  ;;  %v2030_v61 = vshll.u32 %v6038_v44, 16 }
 0x20f   : > { %v6044_v63 = vpop.f32.mrb[52].mxu1  ;;  %v4043_v29 = vpop.f32.mrb[73].mxu0 }
 0x210   : > { %v1964_v60 = vadd.f32 %v4577_v50, %v6015_v52  ;;  %v4044_v11 = vadd.f32 %v4043_v29, %v4042_v22  ;;  %v6047_v39 = vpop.f32.mrb[53].mxu1  ;;  %v4045_v5 = vpop.f32.mrb[74].mxu0  ;;  %v2029_v54 = vrot.slane %v2027_v18, 7  ;;  %v1983_v12 = vmax.f32 %v1963_v38, 0.0  ;;  %v4957_v38 = vld [vmem:[#allocation9 + $0x50] sm:$0xff]  }
 0x211   : > { %v6049_v6 = vpop.f32.mrb[54].mxu1  ;;  %v4046_v26 = vpop.f32.mrb[75].mxu0  ;;  %v2111_v46 = vrot.slane %v2030_v61, 1 }
 0x212   : > { %v1984_v17 = vmax.f32 %v1964_v60, 0.0  ;;  %v4564_v48 = vadd.f32 %v4044_v11, %v5953_v62  ;;  %v4047_v2 = vadd.f32 %v4046_v26, %v4045_v5  ;;  %v6052_v58 = vpop.f32.mrb[55].mxu1  ;;  %v2032_v43 = vor.u32 %v2030_v61, %v2029_v54  ;;  %v4959_v26 = vld [vmem:[#allocation9 + $0x10] sm:$0xff]  }
 0x213   : > { %v2112_v30 = vor.u32 %v2111_v46, %v2027_v18 }
 0x214   : > { %v6054_v0 = vpack.c.bf16 %v1984_v17, %v1983_v12  ;;  %v4565_v51 = vadd.f32 %v4564_v48, %v6019_v59  ;;  %v4572_v9 = vadd.f32 %v4047_v2, %v5961_v31  ;;  %v6060_v55 = vsel %vm5540_vm2, 0, %v2032_v43  ;;  %v4955_v43 = vld [vmem:[#allocation9 + $0x88] sm:$0xff]  }
 0x215   : > { %2480 = vmatmul.mubr.bf16.vlgmr.msra.gmra.mrb[100].mxu0 %v6060_v55  ;;  %v6065_v62 = vsel %vm5686_vm5, %v2112_v30, 0 }
 0x216   : > { %v1965_v49 = vadd.f32 %v4565_v51, %v6015_v52  ;;  %v4573_v23 = vadd.f32 %v4572_v9, %v4437_v47  ;;  %4466 = vmatprep.mubr.bf16.mxu1 %v6065_v62  ;;  %v4048_v10 = vpop.f32.mrb[76].mxu0  ;;  %2487 = vmatprep.mubr.bf16.mxu0 %v6054_v0  ;;  %v2034_v31 = vshrl.u32 %v6054_v0, 16  ;;  %v2037_v59 = vshll.u32 %v6054_v0, 16 }
 0x217   : > { %v6072_v3 = vpop.f32.mrb[56].mxu1  ;;  %v4049_v53 = vpop.f32.mrb[77].mxu0  ;;  %4183 = vmatpush3.bf16.msra.mxu0 %v4953_v37 }
 0x218   : > { %v1966_v34 = vadd.f32 %v4573_v23, %v6015_v52  ;;  %v4050_v25 = vadd.f32 %v4049_v53, %v4048_v10  ;;  %v6075_v57 = vpop.f32.mrb[57].mxu1  ;;  %v4051_v47 = vpop.f32.mrb[78].mxu0  ;;  %v2036_v56 = vrot.slane %v2034_v31, 7  ;;  %4184 = vmatprep.subr.bf16.mxu0 %v4954_v28  ;;  %v1985_v50 = vmax.f32 %v1965_v49, 0.0  ;;  %v4962_v49 = vld [vmem:[#allocation9 + $0x18] sm:$0xff]   ;;  %v4963_v53 = vld [vmem:[#allocation9 + $0x60] sm:$0xff]  }
 0x219   : > { %v6077_v22 = vpop.f32.mrb[58].mxu1  ;;  %v4052_v18 = vpop.f32.mrb[79].mxu0  ;;  %v2113_v61 = vrot.slane %v2037_v59, 1 }
 0x21a   : > { %v1986_v29 = vmax.f32 %v1966_v34, 0.0  ;;  %v4584_v60 = vadd.f32 %v4050_v25, %v5973_v33  ;;  %v4053_v11 = vadd.f32 %v4052_v18, %v4051_v47  ;;  %v6080_v5 = vpop.f32.mrb[59].mxu1  ;;  %v2039_v54 = vor.u32 %v2037_v59, %v2036_v56  ;;  %v4960_v33 = vld [vmem:[#allocation9 + $0x58] sm:$0xff]   ;;  %v4965_v18 = vld [vmem:[#allocation9 + $0x20] sm:$0xff]  }
 0x21b   : > { %v2114_v12 = vor.u32 %v2113_v61, %v2034_v31  ;;  %4185 = vmatpush3.bf16.msra.mxu0 %v4956_v42 }
 0x21c   : > { %v6082_v46 = vpack.c.bf16 %v1986_v29, %v1985_v50  ;;  %v4585_v17 = vadd.f32 %v4584_v60, %v6030_v20  ;;  %v4592_v48 = vadd.f32 %v4053_v11, %v5980_v19  ;;  %v6088_v2 = vsel %vm5540_vm2, 0, %v2039_v54  ;;  %4186 = vmatprep.subr.bf16.mxu0 %v4957_v38  ;;  %v4961_v54 = vld [vmem:[#allocation9 + $0x98] sm:$0xff]  }
 0x21d   : > { %2488 = vmatmul.mubr.bf16.gmra.mrb[104].mxu0 %v6088_v2  ;;  %v6093_v30 = vsel %vm5686_vm5, %v2114_v12, 0 }
 0x21e   : > { %v1967_v37 = vadd.f32 %v4585_v17, %v6015_v52  ;;  %v4593_v51 = vadd.f32 %v4592_v48, %v6035_v8  ;;  %4467 = vmatmul.mubr.bf16.vlgmr.msra.gmra.mrb[60].mxu1 %v6093_v30  ;;  %v4054_v19 = vpop.f32.mrb[80].mxu0  ;;  %2495 = vmatprep.mubr.bf16.mxu0 %v6082_v46  ;;  %v2041_v20 = vshrl.u32 %v6082_v46, 16  ;;  %v2044_v9 = vshll.u32 %v6082_v46, 16  ;;  %v4958_v8 = vld [vmem:[#allocation9 + $0x90] sm:$0xff]  }
 0x21f   : > { %v4055_v28 = vpop.f32.mrb[81].mxu0  ;;  %4483 = vmatpush3.bf16.msra.mxu1 %v5917_v45  ;;  %4187 = vmatpush3.bf16.msra.mxu0 %v4959_v26 }
 0x220   : > { %v1968_v23 = vadd.f32 %v4593_v51, %v6015_v52  ;;  %v4056_v10 = vadd.f32 %v4055_v28, %v4054_v19  ;;  %v4057_v31 = vpop.f32.mrb[82].mxu0  ;;  %v2043_v59 = vrot.slane %v2041_v20, 7  ;;  %4484 = vmatprep.subr.bf16.mxu1 %v4955_v43  ;;  %4188 = vmatprep.subr.bf16.mxu0 %v4960_v33  ;;  %v1987_v42 = vmax.f32 %v1967_v37, 0.0  ;;  %v4968_v33 = vld [vmem:[#allocation9 + $0x28] sm:$0xff]  }
 0x221   : > { %v4058_v34 = vpop.f32.mrb[83].mxu0  ;;  %v2115_v25 = vrot.slane %v2044_v9, 1 }
 0x222   : > { %v1988_v47 = vmax.f32 %v1968_v23, 0.0  ;;  %v4580_v56 = vadd.f32 %v4056_v10, %v5969_v4  ;;  %v4059_v38 = vadd.f32 %v4058_v34, %v4057_v31  ;;  %v2046_v50 = vor.u32 %v2044_v9, %v2043_v59  ;;  %v4966_v4 = vld [vmem:[#allocation9 + $0x68] sm:$0xff]   ;;  %v4969_v9 = vld [vmem:[#allocation9 + $0x70] sm:$0xff]  }
 0x223   : > { %v2116_v45 = vor.u32 %v2115_v25, %v2041_v20  ;;  %4485 = vmatpush3.bf16.msra.mxu1 %v4955_v43  ;;  %4189 = vmatpush3.bf16.msra.mxu0 %v4962_v49 }
 0x224   : > { %v6104_v61 = vpack.c.bf16 %v1988_v47, %v1987_v42  ;;  %v4581_v29 = vadd.f32 %v4580_v56, %v6027_v16  ;;  %v4588_v60 = vadd.f32 %v4059_v38, %v5977_v21  ;;  %v6110_v11 = vsel %vm5540_vm2, 0, %v2046_v50  ;;  %4486 = vmatprep.subr.bf16.mxu1 %v4958_v8  ;;  %4190 = vmatprep.subr.bf16.mxu0 %v4963_v53  ;;  %v4971_v42 = vld [vmem:[#allocation9 + $0x30] sm:$0xff]   ;;  %v4967_v38 = vld [vmem:[#allocation9 + $0xa8] sm:$0xff]  }
 0x225   : > { %2496 = vmatmul.mubr.bf16.gmra.mrb[108].mxu0 %v6110_v11  ;;  %v6115_v12 = vsel %vm5686_vm5, %v2116_v45, 0 }
 0x226   : > { %v1969_v26 = vadd.f32 %v4581_v29, %v6015_v52  ;;  %v4589_v16 = vadd.f32 %v4588_v60, %v6032_v40  ;;  %4470 = vmatprep.mubr.bf16.mxu1 %v6115_v12  ;;  %v4060_v21 = vpop.f32.mrb[84].mxu0  ;;  %2503 = vmatprep.mubr.bf16.mxu0 %v6104_v61  ;;  %v2048_v17 = vshrl.u32 %v6104_v61, 16  ;;  %v2051_v48 = vshll.u32 %v6104_v61, 16  ;;  %v4964_v40 = vld [vmem:[#allocation9 + $0xa0] sm:$0xff]  }
 0x227   : > { %v4061_v43 = vpop.f32.mrb[85].mxu0  ;;  %4487 = vmatpush3.bf16.msra.mxu1 %v4958_v8  ;;  %4191 = vmatpush3.bf16.msra.mxu0 %v4965_v18 }
 0x228   : > { %v1970_v37 = vadd.f32 %v4589_v16, %v6015_v52  ;;  %v4062_v51 = vadd.f32 %v4061_v43, %v4060_v21  ;;  %v4063_v19 = vpop.f32.mrb[86].mxu0  ;;  %v2050_v20 = vrot.slane %v2048_v17, 7  ;;  %4488 = vmatprep.subr.bf16.mxu1 %v4961_v54  ;;  %4192 = vmatprep.subr.bf16.mxu0 %v4966_v4  ;;  %v1989_v28 = vmax.f32 %v1969_v26, 0.0 }
 0x229   : > { %v4064_v49 = vpop.f32.mrb[87].mxu0  ;;  %v2117_v23 = vrot.slane %v2051_v48, 1 }
 0x22a   : > { %v1990_v10 = vmax.f32 %v1970_v37, 0.0  ;;  %v4600_v31 = vadd.f32 %v4062_v51, %v5989_v32  ;;  %v4065_v59 = vadd.f32 %v4064_v49, %v4063_v19  ;;  %v2053_v53 = vor.u32 %v2051_v48, %v2050_v20  ;;  %v4972_v32 = vld [vmem:[#allocation9 + $0x78] sm:$0xff]  }
 0x22b   : > { %v2118_v8 = vor.u32 %v2117_v23, %v2048_v17  ;;  %4489 = vmatpush3.bf16.msra.mxu1 %v4961_v54  ;;  %4193 = vmatpush3.bf16.msra.mxu0 %v4968_v33  ;;  %v4974_v54 = vld [vmem:[#allocation9 + $0x38] sm:$0xff]  }
 0x22c   : > { %v6125_v34 = vpack.c.bf16 %v1990_v10, %v1989_v28  ;;  %v4601_v25 = vadd.f32 %v4600_v31, %v6047_v39  ;;  %v4608_v47 = vadd.f32 %v4065_v59, %v5996_v24  ;;  %v6131_v56 = vsel %vm5540_vm2, 0, %v2053_v53  ;;  %4490 = vmatprep.subr.bf16.mxu1 %v4964_v40  ;;  %4194 = vmatprep.subr.bf16.mxu0 %v4969_v9  ;;  %v4973_v23 = vld [vmem:[#allocation9 + $0xb8] sm:$0xff]  }
 0x22d   : > { %2504 = vmatmul.mubr.bf16.gmra.mrb[112].mxu0 %v6131_v56  ;;  %v6136_v50 = vsel %vm5686_vm5, %v2118_v8, 0 }
 0x22e   : > { %v1971_v45 = vadd.f32 %v4601_v25, %v6015_v52  ;;  %v4609_v39 = vadd.f32 %v4608_v47, %v6052_v58  ;;  %4471 = vmatmul.mubr.bf16.gmra.mrb[64].mxu1 %v6136_v50  ;;  %v4066_v24 = vpop.f32.mrb[88].mxu0  ;;  %2511 = vmatprep.mubr.bf16.mxu0 %v6125_v34  ;;  %v2055_v18 = vshrl.u32 %v6125_v34, 16  ;;  %v2058_v29 = vshll.u32 %v6125_v34, 16  ;;  %v4970_v58 = vld [vmem:[#allocation9 + $0xb0] sm:$0xff]  }
 0x22f   : > { %v4067_v60 = vpop.f32.mrb[89].mxu0  ;;  %4491 = vmatpush3.bf16.msra.mxu1 %v4964_v40  ;;  %4195 = vmatpush3.bf16.msra.mxu0 %v4971_v42 }
 0x230   : > { %v1972_v4 = vadd.f32 %v4609_v39, %v6015_v52  ;;  %v4068_v26 = vadd.f32 %v4067_v60, %v4066_v24  ;;  %v4069_v16 = vpop.f32.mrb[90].mxu0  ;;  %v2057_v21 = vrot.slane %v2055_v18, 7  ;;  %4492 = vmatprep.subr.bf16.mxu1 %v4967_v38  ;;  %4196 = vmatprep.subr.bf16.mxu0 %v4972_v32  ;;  %v1991_v17 = vmax.f32 %v1971_v45, 0.0 }
 0x231   : > { %v4070_v48 = vpop.f32.mrb[91].mxu0  ;;  %v2119_v43 = vrot.slane %v2058_v29, 1 }
 0x232   : > { %v1992_v33 = vmax.f32 %v1972_v4, 0.0  ;;  %v4596_v37 = vadd.f32 %v4068_v26, %v5985_v36  ;;  %v4071_v51 = vadd.f32 %v4070_v48, %v4069_v16  ;;  %v2060_v19 = vor.u32 %v2058_v29, %v2057_v21 }
 0x233   : > { %v2120_v20 = vor.u32 %v2119_v43, %v2055_v18  ;;  %4493 = vmatpush3.bf16.msra.mxu1 %v4967_v38  ;;  %4197 = vmatpush3.bf16.msra.mxu0 %v4974_v54  ;;  %v4975_v38 = vld [vmem:[#allocation9 + $0x1c0] sm:$0xff]  }
 0x234   : > { %v6146_v40 = vpack.c.bf16 %v1992_v33, %v1991_v17  ;;  %v4597_v9 = vadd.f32 %v4596_v37, %v6044_v63  ;;  %v4604_v28 = vadd.f32 %v4071_v51, %v5993_v35  ;;  %v6152_v49 = vsel %vm5540_vm2, 0, %v2060_v19  ;;  %4494 = vmatprep.subr.bf16.mxu1 %v4970_v58 }
 0x235   : > { %2512 = vmatmul.mubr.bf16.gmra.mrb[116].mxu0 %v6152_v49  ;;  %v6157_v36 = vsel %vm5686_vm5, %v2120_v20, 0 }
 0x236   : > { %v1973_v10 = vadd.f32 %v4597_v9, %v6015_v52  ;;  %v4605_v31 = vadd.f32 %v4604_v28, %v6049_v6  ;;  %4474 = vmatprep.mubr.bf16.mxu1 %v6157_v36  ;;  %v4072_v63 = vpop.f32.mrb[92].mxu0  ;;  %2519 = vmatprep.mubr.bf16.mxu0 %v6146_v40  ;;  %v2062_v35 = vshrl.u32 %v6146_v40, 16  ;;  %v2065_v59 = vshll.u32 %v6146_v40, 16 }
 0x237   : > { %v4073_v53 = vpop.f32.mrb[93].mxu0  ;;  %4495 = vmatpush3.bf16.msra.mxu1 %v4970_v58 }
 0x238   : > { %v1974_v8 = vadd.f32 %v4605_v31, %v6015_v52  ;;  %v4074_v42 = vadd.f32 %v4073_v53, %v4072_v63  ;;  %v4075_v25 = vpop.f32.mrb[94].mxu0  ;;  %v2064_v47 = vrot.slane %v2062_v35, 7  ;;  %4496 = vmatprep.subr.bf16.mxu1 %v4973_v23  ;;  %v1993_v32 = vmax.f32 %v1973_v10, 0.0 }
 0x239   : > { %v4076_v6 = vpop.f32.mrb[95].mxu0  ;;  %v2121_v45 = vrot.slane %v2065_v59, 1 }
 0x23a   : > { %v1994_v39 = vmax.f32 %v1974_v8, 0.0  ;;  %v4616_v24 = vadd.f32 %v4074_v42, %v6002_v27  ;;  %v4077_v18 = vadd.f32 %v4076_v6, %v4075_v25  ;;  %v2067_v29 = vor.u32 %v2065_v59, %v2064_v47 }
 0x23b   : > { %v2122_v60 = vor.u32 %v2121_v45, %v2062_v35  ;;  %4497 = vmatpush3.bf16.msra.mxu1 %v4973_v23 }
 0x23c   : > { %v6167_v54 = vpack.c.bf16 %v1994_v39, %v1993_v32  ;;  %v4617_v4 = vadd.f32 %v4616_v24, %v6075_v57  ;;  %v4624_v26 = vadd.f32 %v4077_v18, %v6008_v13  ;;  %v6173_v16 = vsel %vm5540_vm2, 0, %v2067_v29  ;;  %4262 = vmatprep.subr.bf16.mxu1 %v4975_v38 }
 0x23d   : > { %2520 = vmatmul.mubr.bf16.gmra.mrb[120].mxu0 %v6173_v16  ;;  %v6178_v27 = vsel %vm5686_vm5, %v2122_v60, 0  ;;  %v2020_v38 = vshrl.u32 %v6025_v7, 16  ;;  %v2006_v18 = vstv %s2002_s11  ;;  %s5089_s11 = sshll.u32 %s5220_s6, 4  ;;  %s5090_s11 = int_to_ptr.vmem [resolvable:$false] %s5089_s11 }
 0x23e   : > { %v1975_v21 = vadd.f32 %v4617_v4, %v6015_v52  ;;  %v4625_v58 = vadd.f32 %v4624_v26, %v6080_v5  ;;  %4475 = vmatmul.mubr.bf16.gmra.mrb[68].mxu1 %v6178_v27  ;;  %v4078_v57 = vpop.f32.mrb[96].mxu0  ;;  %2527 = vmatprep.mubr.bf16.mxu0 %v6167_v54  ;;  %v2069_v13 = vshrl.u32 %v6167_v54, 16  ;;  %v2072_v17 = vshll.u32 %v6167_v54, 16  ;;  %s5091_s16 = scalar_lea.vmem %s5090_s11, 4096  ;;  %p5092_p2 = scmp.lt.s32.totalorder %s6419_s25, %s5090_s11 }
 0x23f   : > { %v4079_v48 = vpop.f32.mrb[97].mxu0  ;;  %v2023_v5 = vshll.u32 %v6025_v7, 16  ;;  %v2022_v4 = vrot.slane %v2020_v38, 7  ;;  %p5093_p6 = scmp.lt.s32.totalorder %s5091_s16, %s5085_s29 }
 0x240   : > { %v1976_v43 = vadd.f32 %v4625_v58, %v6015_v52  ;;  %v4080_v33 = vadd.f32 %v4079_v48, %v4078_v57  ;;  %v4081_v37 = vpop.f32.mrb[98].mxu0  ;;  %v2071_v51 = vrot.slane %v2069_v13, 7  ;;  %v1995_v19 = vmax.f32 %v1975_v21, 0.0  ;;  %v4976_v48 = vld [vmem:[#allocation9 + $0x180] sm:$0xff]  }
 0x241   : > { %v4082_v20 = vpop.f32.mrb[99].mxu0  ;;  %v2123_v9 = vrot.slane %v2072_v17, 1  ;;  %p5094_p10 = por %p5093_p6, %p5092_p2 }
 0x242   : > { %v1996_v28 = vmax.f32 %v1976_v43, 0.0  ;;  %v4612_v23 = vadd.f32 %v4080_v33, %v5999_v15  ;;  %v4083_v10 = vadd.f32 %v4082_v20, %v4081_v37  ;;  %v2074_v31 = vor.u32 %v2072_v17, %v2071_v51  ;;  %v4977_v33 = vld [vmem:[#allocation9 + $0x1c8] sm:$0xff]   ;;  %v4980_v51 = vld [vmem:[#allocation9 + $0x190] sm:$0xff]   ;;  %v4984_v20 = vld [vmem:[#allocation9 + $0x1a0] sm:$0xff]  }
 0x243   : > { %v2124_v63 = vor.u32 %v2123_v9, %v2069_v13  ;;  %v2109_v15 = vrot.slane %v2023_v5, 1  ;;  %v2025_v17 = vor.u32 %v2023_v5, %v2022_v4  ;;  %v4978_v37 = vld [vmem:[#allocation9 + $0x188] sm:$0xff]   ;;  %v4987_v5 = vld [vmem:[#allocation9 + $0x1f0] sm:$0xff]   ;;  %p5095_p0 = pnand %p5094_p10, %p5088_p12 }
 0x244   : > { %v4613_v35 = vadd.f32 %v4612_v23, %v6072_v3  ;;  %v4620_v59 = vadd.f32 %v4083_v10, %v6005_v14  ;;  %v6195_v53 = vsel %vm5540_vm2, 0, %v2074_v31  ;;  %v6197_v8 = vpack.c.bf16 %v1996_v28, %v1995_v19  ;;  %v4981_v19 = vld [vmem:[#allocation9 + $0x1d8] sm:$0xff]   ;;  %v4985_v9 = vld [vmem:[#allocation9 + $0x1e8] sm:$0xff]   ;;  %v4988_v28 = vld [vmem:[#allocation9 + $0x1b0] sm:$0xff]  }
 0x245   : > { %2528 = vmatmul.mubr.bf16.gmra.mrb[124].mxu0 %v6195_v53  ;;  %v6202_v42 = vsel %vm5686_vm5, %v2124_v63, 0  ;;  %v2110_v24 = vor.u32 %v2109_v15, %v2020_v38  ;;  %v2099_v43 = vsel %vm5540_vm2, 0, %v2025_v17  ;;  %v4989_v23 = vld [vmem:[#allocation9 + $0x1f8] sm:$0xff]   ;;  %v4991_v31 = vld [vmem:[#allocation9 + $0x200] sm:$0xff]   ;;  %v4992_v63 = vld [vmem:[#allocation9 + $0x208] sm:$0xff]  }
 0x246   : > { %v1977_v25 = vadd.f32 %v4613_v35, %v6015_v52  ;;  %v4621_v3 = vadd.f32 %v4620_v59, %v6077_v22  ;;  %4478 = vmatprep.mubr.bf16.mxu1 %v6202_v42  ;;  %2535 = vmatprep.mubr.bf16.mxu0 %v6197_v8  ;;  %v2076_v14 = vshrl.u32 %v6197_v8, 16  ;;  %v2079_v47 = vshll.u32 %v6197_v8, 16  ;;  %v4990_v10 = vld [vmem:[#allocation9 + $0x1b8] sm:$0xff]   ;;  %v4993_v35 = vld [vmem:[#allocation9 + $0x210] sm:$0xff]  }
 0x248   : > { %v1997_v32 = vmax.f32 %v1977_v25, 0.0  ;;  %v1978_v6 = vadd.f32 %v4621_v3, %v6015_v52  ;;  %v2078_v45 = vrot.slane %v2076_v14, 7  ;;  %v2125_v39 = vrot.slane %v2079_v47, 1 }
 0x249   : > { %v2139_v52 = vsel %vm5686_vm5, %v2110_v24, 0 }
 0x24a   : > { %v1998_v29 = vmax.f32 %v1978_v6, 0.0  ;;  %v2081_v60 = vor.u32 %v2079_v47, %v2078_v45  ;;  %v2126_v22 = vor.u32 %v2125_v39, %v2076_v14  ;;  %v2007_v58 = vmul.f32 %v2006_v18, %v1997_v32 }
 0x24c   : > { %v6214_v26 = vsel %vm5540_vm2, 0, %v2081_v60  ;;  %v6218_v21 = vsel %vm5686_vm5, %v2126_v22, 0  ;;  %v2008_v57 = vmul.f32 %v2006_v18, %v1998_v29 }
 0x24d   : > { %2536 = vmatmul.mubr.bf16.gmra.mrb[128].mxu0 %v6214_v26  ;;  %4479 = vmatmul.mubr.bf16.gmra.mrb[72].mxu1 %v6218_v21 }
 0x24e   : > { %2817 = vmatprep.mubr.bf16.mxu0 %v6025_v7  ;;  %4498 = vmatprep.mubr.bf16.mxu1 %v2139_v52  ;;  %v6225_v13 = vpack.c.bf16 %v2008_v57, %v2007_v58  ;;  %v4979_v7 = vld [vmem:[#allocation9 + $0x1d0] sm:$0xff]  }
 0x255   : > { %2818 = vmatmul.mubr.bf16.vlgmr.msra.gmra.mrb[132].mxu0 %v2099_v43  ;;  %4499 = vmatmul.mubr.bf16.vlgmr.msra.gmra.mrb[60].mxu1 %v6065_v62  ;;  %v4983_v62 = vld [vmem:[#allocation9 + $0x1e0] sm:$0xff]  }
 0x256   : > { %2825 = vmatprep.mubr.bf16.mxu0 %v6038_v44  ;;  %4502 = vmatprep.mubr.bf16.mxu1 %v6093_v30  ;;  %v4982_v44 = vld [vmem:[#allocation9 + $0x198] sm:$0xff]  }
 0x257   : > { %4263 = vmatpush3.bf16.msra.mxu1 %v4976_v48 }
 0x258   : > { %4264 = vmatprep.subr.bf16.mxu1 %v4977_v33 }
 0x25b   : > { %4265 = vmatpush3.bf16.msra.mxu1 %v4978_v37 }
 0x25c   : > { %4266 = vmatprep.subr.bf16.mxu1 %v4979_v7 }
 0x25d   : > { %2826 = vmatmul.mubr.bf16.gmra.mrb[136].mxu0 %v6060_v55  ;;  %4503 = vmatmul.mubr.bf16.gmra.mrb[64].mxu1 %v6115_v12  ;;  %v4986_v55 = vld [vmem:[#allocation9 + $0x1a8] sm:$0xff]  }
 0x25e   : > { %2833 = vmatprep.mubr.bf16.mxu0 %v6054_v0  ;;  %4506 = vmatprep.mubr.bf16.mxu1 %v6136_v50 }
 0x25f   : > { %4267 = vmatpush3.bf16.msra.mxu1 %v4980_v51 }
 0x260   : > { %4268 = vmatprep.subr.bf16.mxu1 %v4981_v19 }
 0x263   : > { %4269 = vmatpush3.bf16.msra.mxu1 %v4982_v44 }
 0x264   : > { %4270 = vmatprep.subr.bf16.mxu1 %v4983_v62 }
 0x265   : > { %2834 = vmatmul.mubr.bf16.gmra.mrb[140].mxu0 %v6088_v2  ;;  %4507 = vmatmul.mubr.bf16.gmra.mrb[68].mxu1 %v6157_v36 }
 0x266   : > { %2841 = vmatprep.mubr.bf16.mxu0 %v6082_v46  ;;  %4510 = vmatprep.mubr.bf16.mxu1 %v6178_v27 }
 0x267   : > { %4271 = vmatpush3.bf16.msra.mxu1 %v4984_v20 }
 0x268   : > { %4272 = vmatprep.subr.bf16.mxu1 %v4985_v9 }
 0x26b   : > { %4273 = vmatpush3.bf16.msra.mxu1 %v4986_v55 }
 0x26c   : > { %4274 = vmatprep.subr.bf16.mxu1 %v4987_v5 }
 0x26d   : > { %2842 = vmatmul.mubr.bf16.gmra.mrb[144].mxu0 %v6110_v11  ;;  %4511 = vmatmul.mubr.bf16.gmra.mrb[72].mxu1 %v6202_v42 }
 0x26e   : > { %2849 = vmatprep.mubr.bf16.mxu0 %v6104_v61  ;;  %3228 = vmatprep.mubr.bf16.mxu1 %v6054_v0  ;;  %v4994_v0 = vld [vmem:[#allocation9 + $0x218] sm:$0xff]  }
 0x26f   : > { %4275 = vmatpush3.bf16.msra.mxu1 %v4988_v28 }
 0x270   : > { %4276 = vmatprep.subr.bf16.mxu1 %v4989_v23 }
 0x273   : > { %4277 = vmatpush3.bf16.msra.mxu1 %v4990_v10 }
 0x274   : > { %4514 = vmatprep.subr.bf16.mxu1 %v4991_v31 }
 0x275   : > { %2850 = vmatmul.mubr.bf16.gmra.mrb[148].mxu0 %v6131_v56 }
 0x276   : > { %3229 = vmatmul.mubr.bf16.vlgmr.msra.gmra.mrb[76].mxu1 %v6088_v2  ;;  %2857 = vmatprep.mubr.bf16.mxu0 %v6125_v34  ;;  %v4995_v2 = vld [vmem:[#allocation9 + $0x220] sm:$0xff]  }
 0x277   : > { %3236 = vmatprep.mubr.bf16.mxu1 %v6082_v46  ;;  %4515 = vmatpush3.bf16.msra.mxu1 %v4991_v31  ;;  %v4996_v46 = vld [vmem:[#allocation9 + $0x228] sm:$0xff]  }
 0x278   : > { %4516 = vmatprep.subr.bf16.mxu1 %v4992_v63 }
 0x27b   : > { %4517 = vmatpush3.bf16.msra.mxu1 %v4992_v63 }
 0x27c   : > { %4518 = vmatprep.subr.bf16.mxu1 %v4993_v35 }
 0x27d   : > { %2858 = vmatmul.mubr.bf16.gmra.mrb[152].mxu0 %v6152_v49 }
 0x27e   : > { %3237 = vmatmul.mubr.bf16.gmra.mrb[80].mxu1 %v6110_v11  ;;  %2865 = vmatprep.mubr.bf16.mxu0 %v6146_v40  ;;  %v4997_v11 = vld [vmem:[#allocation9 + $0x230] sm:$0xff]  }
 0x27f   : > { %3244 = vmatprep.mubr.bf16.mxu1 %v6104_v61  ;;  %4519 = vmatpush3.bf16.msra.mxu1 %v4993_v35  ;;  %v4998_v61 = vld [vmem:[#allocation9 + $0x238] sm:$0xff]  }
 0x280   : > { %4520 = vmatprep.subr.bf16.mxu1 %v4994_v0 }
 0x283   : > { %4521 = vmatpush3.bf16.msra.mxu1 %v4994_v0 }
 0x284   : > { %4522 = vmatprep.subr.bf16.mxu1 %v4995_v2 }
 0x285   : > { %2866 = vmatmul.mubr.bf16.gmra.mrb[156].mxu0 %v6173_v16 }
 0x286   : > { %3245 = vmatmul.mubr.bf16.gmra.mrb[84].mxu1 %v6131_v56  ;;  %2873 = vmatprep.mubr.bf16.mxu0 %v6167_v54 }
 0x287   : > { %3252 = vmatprep.mubr.bf16.mxu1 %v6125_v34  ;;  %4523 = vmatpush3.bf16.msra.mxu1 %v4995_v2  ;;  %v2083_v34 = vshrl.u32 %v6225_v13, 16 }
 0x288   : > { %4524 = vmatprep.subr.bf16.mxu1 %v4996_v46 }
 0x289   : > { %v2085_v56 = vrot.slane %v2083_v34, 7 }
 0x28b   : > { %4525 = vmatpush3.bf16.msra.mxu1 %v4996_v46 }
 0x28c   : > { %4526 = vmatprep.subr.bf16.mxu1 %v4997_v11 }
 0x28d   : > { %2874 = vmatmul.mubr.bf16.gmra.mrb[160].mxu0 %v6195_v53 }
 0x28e   : > { %3253 = vmatmul.mubr.bf16.gmra.mrb[88].mxu1 %v6152_v49 }
 0x28f   : > { %3260 = vmatprep.mubr.bf16.mxu1 %v6146_v40  ;;  %4527 = vmatpush3.bf16.msra.mxu1 %v4997_v11  ;;  %v2086_v40 = vshll.u32 %v6225_v13, 16 }
 0x290   : > { %4528 = vmatprep.subr.bf16.mxu1 %v4998_v61 }
 0x291   : > { %v2088_v49 = vor.u32 %v2086_v40, %v2085_v56 }
 0x293   : > { %4529 = vmatpush3.bf16.msra.mxu1 %v4998_v61  ;;  %v2108_v59 = vsel %vm5540_vm2, 0, %v2088_v49 }
 0x296   : > { %3261 = vmatmul.mubr.bf16.gmra.mrb[92].mxu1 %v6173_v16 }
 0x297   : > { %3268 = vmatprep.mubr.bf16.mxu1 %v6167_v54  ;;  %v2127_v54 = vrot.slane %v2086_v40, 1 }
 0x299   : > { %v2128_v16 = vor.u32 %v2127_v54, %v2083_v34 }
 0x29b   : > { %v2148_v1 = vsel %vm5686_vm5, %v2128_v16, 0 }
 0x29e   : > { %3269 = vmatmul.mubr.bf16.gmra.mrb[96].mxu1 %v6195_v53 }
 0x29f   : > { %3276 = vmatprep.mubr.bf16.mxu1 %v6197_v8 }
 0x2a6   : > { %3277 = vmatmul.mubr.bf16.gmra.mrb[100].mxu1 %v6214_v26 }
 0x2a7   : > { %3284 = vmatprep.mubr.bf16.mxu1 %v6225_v13 }
 0x2ae   : > { %3285 = vmatmul.mubr.bf16.gmra.mrb[104].mxu1 %v2108_v59 }
 0x2af   : > { %4530 = vmatprep.mubr.bf16.mxu1 %v6093_v30 }
 0x2b6   : > { %4531 = vmatmul.mubr.bf16.vlgmr.msra.gmra.mrb[60].mxu1 %v6115_v12 }
 0x2b7   : > { %4534 = vmatprep.mubr.bf16.mxu1 %v6136_v50 }
 0x2be   : > { %4535 = vmatmul.mubr.bf16.gmra.mrb[64].mxu1 %v6157_v36 }
 0x2bf   : > { %4538 = vmatprep.mubr.bf16.mxu1 %v6178_v27 }
 0x2c6   : > { %4539 = vmatmul.mubr.bf16.gmra.mrb[68].mxu1 %v6202_v42 }
 0x2c7   : > { %4542 = vmatprep.mubr.bf16.mxu1 %v6218_v21 }
 0x2ce   : > { %4543 = vmatmul.mubr.bf16.gmra.mrb[72].mxu1 %v2148_v1 }
 0x2e8   : > { %v4118_v53 = vpop.f32.mrb[100].mxu0 }
 0x2e9   : > { %v4119_v30 = vpop.f32.mrb[101].mxu0 }
 0x2ea   : > { %v4120_v8 = vadd.f32 %v4119_v30, %v4118_v53  ;;  %v4121_v12 = vpop.f32.mrb[102].mxu0 }
 0x2eb   : > { %v4122_v15 = vpop.f32.mrb[103].mxu0 }
 0x2ec   : > { %v4123_v50 = vadd.f32 %v4122_v15, %v4121_v12 }
 0x2f0   : > { %v4124_v25 = vpop.f32.mrb[104].mxu0 }
 0x2f1   : > { %v4125_v36 = vpop.f32.mrb[105].mxu0 }
 0x2f2   : > { %v4126_v3 = vadd.f32 %v4125_v36, %v4124_v25  ;;  %v4127_v27 = vpop.f32.mrb[106].mxu0 }
 0x2f3   : > { %v4128_v14 = vpop.f32.mrb[107].mxu0 }
 0x2f4   : > { %v4129_v47 = vadd.f32 %v4128_v14, %v4127_v27 }
 0x2f8   : > { %v4130_v42 = vpop.f32.mrb[108].mxu0 }
 0x2f9   : > { %v4131_v38 = vpop.f32.mrb[109].mxu0 }
 0x2fa   : > { %v4132_v32 = vadd.f32 %v4131_v38, %v4130_v42  ;;  %v4133_v6 = vpop.f32.mrb[110].mxu0 }
 0x2fb   : > { %v4134_v45 = vpop.f32.mrb[111].mxu0 }
 0x2fc   : > { %v4135_v41 = vadd.f32 %v4134_v45, %v4133_v6 }
 0x300   : > { %v4136_v39 = vpop.f32.mrb[112].mxu0 }
 0x301   : > { %v4137_v24 = vpop.f32.mrb[113].mxu0 }
 0x302   : > { %v4138_v18 = vadd.f32 %v4137_v24, %v4136_v39  ;;  %v4139_v29 = vpop.f32.mrb[114].mxu0 }
 0x303   : > { %v4140_v60 = vpop.f32.mrb[115].mxu0 }
 0x304   : > { %v4141_v22 = vadd.f32 %v4140_v60, %v4139_v29 }
 0x308   : > { %v4142_v4 = vpop.f32.mrb[116].mxu0 }
 0x309   : > { %v4143_v26 = vpop.f32.mrb[117].mxu0 }
 0x30a   : > { %v6278_v21 = vadd.f32 %v4143_v26, %v4142_v4  ;;  %v4145_v58 = vpop.f32.mrb[118].mxu0 }
 0x30b   : > { %v4146_v57 = vpop.f32.mrb[119].mxu0 }
 0x30c   : > { %v6280_v52 = vadd.f32 %v4146_v57, %v4145_v58 }
 0x310   : > { %v4148_v13 = vpop.f32.mrb[120].mxu0 }
 0x311   : > { %v4149_v17 = vpop.f32.mrb[121].mxu0 }
 0x312   : > { %v6282_v48 = vadd.f32 %v4149_v17, %v4148_v13  ;;  %v4151_v43 = vpop.f32.mrb[122].mxu0 }
 0x313   : > { %v4152_v33 = vpop.f32.mrb[123].mxu0 }
 0x314   : > { %v6284_v37 = vadd.f32 %v4152_v33, %v4151_v43 }
 0x318   : > { %v4154_v7 = vpop.f32.mrb[124].mxu0 }
 0x319   : > { %v4155_v51 = vpop.f32.mrb[125].mxu0 }
 0x31a   : > { %v6286_v19 = vadd.f32 %v4155_v51, %v4154_v7  ;;  %v4157_v44 = vpop.f32.mrb[126].mxu0 }
 0x31b   : > { %v4158_v62 = vpop.f32.mrb[127].mxu0 }
 0x31c   : > { %v6288_v20 = vadd.f32 %v4158_v62, %v4157_v44 }
 0x320   : > { %v4160_v9 = vpop.f32.mrb[128].mxu0 }
 0x321   : > { %v4161_v55 = vpop.f32.mrb[129].mxu0 }
 0x322   : > { %v6290_v5 = vadd.f32 %v4161_v55, %v4160_v9  ;;  %v4163_v28 = vpop.f32.mrb[130].mxu0 }
 0x323   : > { %v4164_v23 = vpop.f32.mrb[131].mxu0 }
 0x324   : > { %v6292_v10 = vadd.f32 %v4164_v23, %v4163_v28 }
 0x328   : > { %v4198_v31 = vpop.f32.mrb[132].mxu0 }
 0x329   : > { %v4199_v63 = vpop.f32.mrb[133].mxu0 }
 0x32a   : > { %v4200_v35 = vadd.f32 %v4199_v63, %v4198_v31  ;;  %v4201_v0 = vpop.f32.mrb[134].mxu0 }
 0x32b   : > { %v4202_v2 = vpop.f32.mrb[135].mxu0 }
 0x32c   : > { %v4629_v46 = vadd.f32 %v4200_v35, %v4120_v8  ;;  %v4203_v11 = vadd.f32 %v4202_v2, %v4201_v0 }
 0x32e   : > { %v4635_v61 = vadd.f32 %v4203_v11, %v4123_v50 }
 0x330   : > { %v4204_v34 = vpop.f32.mrb[136].mxu0 }
 0x331   : > { %v4205_v56 = vpop.f32.mrb[137].mxu0 }
 0x332   : > { %v4206_v40 = vadd.f32 %v4205_v56, %v4204_v34  ;;  %v4207_v49 = vpop.f32.mrb[138].mxu0 }
 0x333   : > { %v4208_v59 = vpop.f32.mrb[139].mxu0 }
 0x334   : > { %v4626_v54 = vadd.f32 %v4206_v40, %v4126_v3  ;;  %v4209_v16 = vadd.f32 %v4208_v59, %v4207_v49 }
 0x336   : > { %v4632_v1 = vadd.f32 %v4209_v16, %v4129_v47 }
 0x338   : > { %v4210_v53 = vpop.f32.mrb[140].mxu0 }
 0x339   : > { %v4211_v30 = vpop.f32.mrb[141].mxu0 }
 0x33a   : > { %v4212_v12 = vadd.f32 %v4211_v30, %v4210_v53  ;;  %v4213_v15 = vpop.f32.mrb[142].mxu0 }
 0x33b   : > { %v4214_v25 = vpop.f32.mrb[143].mxu0 }
 0x33c   : > { %v4641_v36 = vadd.f32 %v4212_v12, %v4132_v32  ;;  %v4215_v27 = vadd.f32 %v4214_v25, %v4213_v15 }
 0x33e   : > { %v4647_v14 = vadd.f32 %v4215_v27, %v4135_v41 }
 0x340   : > { %v4216_v42 = vpop.f32.mrb[144].mxu0 }
 0x341   : > { %v4217_v8 = vpop.f32.mrb[145].mxu0 }
 0x342   : > { %v4218_v38 = vadd.f32 %v4217_v8, %v4216_v42  ;;  %v4219_v50 = vpop.f32.mrb[146].mxu0 }
 0x343   : > { %v4220_v6 = vpop.f32.mrb[147].mxu0 }
 0x344   : > { %v6294_v45 = vadd.f32 %v4218_v38, %v4138_v18  ;;  %v4221_v39 = vadd.f32 %v4220_v6, %v4219_v50 }
 0x346   : > { %v6296_v24 = vadd.f32 %v4221_v39, %v4141_v22 }
 0x348   : > { %v4222_v3 = vpop.f32.mrb[148].mxu0 }
 0x349   : > { %v4278_v47 = vpop.f32.mrb[76].mxu1  ;;  %v4223_v29 = vpop.f32.mrb[149].mxu0 }
 0x34a   : > { %v4224_v60 = vadd.f32 %v4223_v29, %v4222_v3  ;;  %v4279_v4 = vpop.f32.mrb[77].mxu1  ;;  %v4225_v26 = vpop.f32.mrb[150].mxu0 }
 0x34b   : > { %v4280_v58 = vadd.f32 %v4279_v4, %v4278_v47  ;;  %v4281_v32 = vpop.f32.mrb[78].mxu1  ;;  %v4226_v57 = vpop.f32.mrb[151].mxu0 }
 0x34c   : > { %v4653_v41 = vadd.f32 %v4224_v60, %v6278_v21  ;;  %v4227_v13 = vadd.f32 %v4226_v57, %v4225_v26  ;;  %v4282_v17 = vpop.f32.mrb[79].mxu1 }
 0x34d   : > { %v4283_v43 = vadd.f32 %v4282_v17, %v4281_v32  ;;  %v6299_v33 = vadd.f32 %v4629_v46, %v4280_v58 }
 0x34e   : > { %v4659_v18 = vadd.f32 %v4227_v13, %v6280_v52 }
 0x34f   : > { %v6302_v22 = vadd.f32 %v4635_v61, %v4283_v43 }
 0x350   : > { %v4228_v7 = vpop.f32.mrb[152].mxu0 }
 0x351   : > { %v4284_v51 = vpop.f32.mrb[80].mxu1  ;;  %v4229_v44 = vpop.f32.mrb[153].mxu0 }
 0x352   : > { %v4230_v62 = vadd.f32 %v4229_v44, %v4228_v7  ;;  %v4285_v9 = vpop.f32.mrb[81].mxu1  ;;  %v4231_v55 = vpop.f32.mrb[154].mxu0 }
 0x353   : > { %v4286_v28 = vadd.f32 %v4285_v9, %v4284_v51  ;;  %v4287_v23 = vpop.f32.mrb[82].mxu1  ;;  %v4232_v31 = vpop.f32.mrb[155].mxu0 }
 0x354   : > { %v4650_v21 = vadd.f32 %v4230_v62, %v6282_v48  ;;  %v4233_v63 = vadd.f32 %v4232_v31, %v4231_v55  ;;  %v4288_v35 = vpop.f32.mrb[83].mxu1 }
 0x355   : > { %v4289_v0 = vadd.f32 %v4288_v35, %v4287_v23  ;;  %v6305_v2 = vadd.f32 %v4626_v54, %v4286_v28 }
 0x356   : > { %v4656_v52 = vadd.f32 %v4233_v63, %v6284_v37 }
 0x357   : > { %v6308_v46 = vadd.f32 %v4632_v1, %v4289_v0 }
 0x358   : > { %v4234_v11 = vpop.f32.mrb[156].mxu0 }
 0x359   : > { %v4290_v61 = vpop.f32.mrb[84].mxu1  ;;  %v4235_v34 = vpop.f32.mrb[157].mxu0 }
 0x35a   : > { %v4236_v56 = vadd.f32 %v4235_v34, %v4234_v11  ;;  %v4291_v40 = vpop.f32.mrb[85].mxu1  ;;  %v4237_v49 = vpop.f32.mrb[158].mxu0 }
 0x35b   : > { %v4292_v59 = vadd.f32 %v4291_v40, %v4290_v61  ;;  %v4293_v16 = vpop.f32.mrb[86].mxu1  ;;  %v4238_v53 = vpop.f32.mrb[159].mxu0 }
 0x35c   : > { %v4665_v48 = vadd.f32 %v4236_v56, %v6286_v19  ;;  %v4239_v30 = vadd.f32 %v4238_v53, %v4237_v49  ;;  %v4294_v12 = vpop.f32.mrb[87].mxu1  ;;  %v6344_v49 = vld [vmem:[%s6491_s4] ss:$0 sm:$0xff]  ;;  %v3431_v53 = vld [vmem:[%s5522_s1 + $0x10] sm:$0xff] }
 0x35d   : > { %v4295_v15 = vadd.f32 %v4294_v12, %v4293_v16  ;;  %v6311_v54 = vadd.f32 %v4641_v36, %v4292_v59 }
 0x35e   : > { %v4671_v37 = vadd.f32 %v4239_v30, %v6288_v20 }
 0x35f   : > { %v6314_v1 = vadd.f32 %v4647_v14, %v4295_v15  ;;  %v3429_v15 = vld [vmem:[%s5522_s1] sm:$0xff] }
 0x360   : > { %v4240_v25 = vpop.f32.mrb[160].mxu0 }
 0x361   : > { %v4296_v27 = vpop.f32.mrb[88].mxu1  ;;  %v4241_v42 = vpop.f32.mrb[161].mxu0 }
 0x362   : > { %v4242_v8 = vadd.f32 %v4241_v42, %v4240_v25  ;;  %v4297_v38 = vpop.f32.mrb[89].mxu1  ;;  %v4243_v50 = vpop.f32.mrb[162].mxu0  ;;  %v3432_v42 = vld [vmem:[%s5522_s1 + $0x18] sm:$0xff] }
 0x363   : > { %v4298_v6 = vadd.f32 %v4297_v38, %v4296_v27  ;;  %v4299_v39 = vpop.f32.mrb[90].mxu1  ;;  %v4244_v3 = vpop.f32.mrb[163].mxu0 }
 0x364   : > { %v4662_v19 = vadd.f32 %v4242_v8, %v6290_v5  ;;  %v4245_v47 = vadd.f32 %v4244_v3, %v4243_v50  ;;  %v4300_v29 = vpop.f32.mrb[91].mxu1  ;;  %v3430_v50 = vld [vmem:[%s5522_s1 + $0x8] sm:$0xff] }
 0x365   : > { %v4301_v60 = vadd.f32 %v4300_v29, %v4299_v39  ;;  %v6318_v36 = vadd.f32 %v6294_v45, %v4298_v6 }
 0x366   : > { %v4668_v20 = vadd.f32 %v4245_v47, %v6292_v10  ;;  %v3435_v47 = vld [vmem:[%s5522_s1 + $0x30] sm:$0xff] }
 0x367   : > { %v6322_v14 = vadd.f32 %v6296_v24, %v4301_v60 }
 0x369   : > { %v4302_v4 = vpop.f32.mrb[92].mxu1 }
 0x36a   : > { %v4303_v26 = vpop.f32.mrb[93].mxu1 }
 0x36b   : > { %v4304_v58 = vadd.f32 %v4303_v26, %v4302_v4  ;;  %v4305_v32 = vpop.f32.mrb[94].mxu1  ;;  %v3433_v4 = vld [vmem:[%s5522_s1 + $0x20] sm:$0xff] }
 0x36c   : > { %v4306_v57 = vpop.f32.mrb[95].mxu1 }
 0x36d   : > { %v4307_v13 = vadd.f32 %v4306_v57, %v4305_v32  ;;  %v6324_v17 = vadd.f32 %v4653_v41, %v4304_v58  ;;  %v3436_v57 = vld [vmem:[%s5522_s1 + $0x38] sm:$0xff] }
 0x36f   : > { %v6326_v5 = vadd.f32 %v4659_v18, %v4307_v13 }
 0x371   : > { %v4308_v43 = vpop.f32.mrb[96].mxu1 }
 0x372   : > { %v4309_v7 = vpop.f32.mrb[97].mxu1 }
 0x373   : > { %v4310_v51 = vadd.f32 %v4309_v7, %v4308_v43  ;;  %v4311_v45 = vpop.f32.mrb[98].mxu1 }
 0x374   : > { %v4312_v44 = vpop.f32.mrb[99].mxu1 }
 0x375   : > { %v4313_v62 = vadd.f32 %v4312_v44, %v4311_v45  ;;  %v6328_v10 = vadd.f32 %v4650_v21, %v4310_v51 }
 0x377   : > { %v6330_v24 = vadd.f32 %v4656_v52, %v4313_v62 }
 0x379   : > { %v4314_v9 = vpop.f32.mrb[100].mxu1 }
 0x37a   : > { %v4315_v55 = vpop.f32.mrb[101].mxu1 }
 0x37b   : > { %v4316_v28 = vadd.f32 %v4315_v55, %v4314_v9  ;;  %v4317_v23 = vpop.f32.mrb[102].mxu1 }
 0x37c   : > { %v4318_v41 = vpop.f32.mrb[103].mxu1 }
 0x37d   : > { %v4319_v31 = vadd.f32 %v4318_v41, %v4317_v23  ;;  %v6332_v18 = vadd.f32 %v4665_v48, %v4316_v28  ;;  %v3437_v41 = vld [vmem:[%s5522_s1 + $0x40] sm:$0xff] }
 0x37f   : > { %v6334_v63 = vadd.f32 %v4671_v37, %v4319_v31 }
 0x381   : > { %v4320_v35 = vpop.f32.mrb[104].mxu1 }
 0x382   : > { %v4321_v0 = vpop.f32.mrb[105].mxu1 }
 0x383   : > { %v4322_v11 = vadd.f32 %v4321_v0, %v4320_v35  ;;  %v4323_v21 = vpop.f32.mrb[106].mxu1 }
 0x384   : > { %v4324_v52 = vpop.f32.mrb[107].mxu1 }
 0x385   : > { %v4325_v61 = vadd.f32 %v4324_v52, %v4323_v21  ;;  %v6336_v34 = vadd.f32 %v4662_v19, %v4322_v11 }
 0x387   : > { %v6339_v56 = vadd.f32 %v4668_v20, %v4325_v61 }
 0x389   : > { %v4532_v40 = vpop.f32.mrb[60].mxu1 }
 0x38a   : > { %v4628_v59 = vadd.f32 %v6305_v2, %v4532_v40  ;;  %v3327_v16 = vpop.f32.mrb[61].mxu1 }
 0x38b   : > { %v4631_v48 = vadd.f32 %v6299_v33, %v3327_v16  ;;  %v4533_v30 = vpop.f32.mrb[62].mxu1 }
 0x38c   : > { %v3415_v12 = vadd.f32 %v4628_v59, %v6344_v49  ;;  %v4634_v37 = vadd.f32 %v6308_v46, %v4533_v30  ;;  %v3330_v25 = vpop.f32.mrb[63].mxu1 }
 0x38d   : > { %v3413_v27 = vadd.f32 %v4631_v48, %v6344_v49  ;;  %v4637_v8 = vadd.f32 %v6302_v22, %v3330_v25  ;;  %v3443_v48 = vld [vmem:[%s5522_s1 + $0x70] sm:$0xff] }
 0x38e   : > { %v3447_v38 = vadd.f32 %v3431_v53, %v3415_v12  ;;  %v3416_v2 = vadd.f32 %v4634_v37, %v6344_v49  ;;  %v3441_v37 = vld [vmem:[%s5522_s1 + $0x60] sm:$0xff] }
 0x38f   : > { %v3445_v6 = vadd.f32 %v3429_v15, %v3413_v27  ;;  %v3414_v33 = vadd.f32 %v4637_v8, %v6344_v49 }
 0x390   : > { %3463 = vst [vmem:[%s6360_s13 + $0x10] sm:$0xff] %v3447_v38  ;;  %v3448_v46 = vadd.f32 %v3432_v42, %v3416_v2  ;;  %v3442_v2 = vld [vmem:[%s5522_s1 + $0x68] sm:$0xff] }
 0x391   : > { %3461 = vst [vmem:[%s6360_s13] sm:$0xff] %v3445_v6  ;;  %v3446_v22 = vadd.f32 %v3430_v50, %v3414_v33  ;;  %v4536_v39 = vpop.f32.mrb[64].mxu1 }
 0x392   : > { %3464 = vst [vmem:[%s6360_s13 + $0x18] sm:$0xff] %v3448_v46  ;;  %v4640_v3 = vadd.f32 %v6318_v36, %v4536_v39  ;;  %v3343_v19 = vpop.f32.mrb[65].mxu1 }
 0x393   : > { %3462 = vst [vmem:[%s6360_s13 + $0x8] sm:$0xff] %v3446_v22  ;;  %v4643_v29 = vadd.f32 %v6311_v54, %v3343_v19  ;;  %v4537_v60 = vpop.f32.mrb[66].mxu1  ;;  %v3434_v54 = vld [vmem:[%s5522_s1 + $0x28] sm:$0xff] }
 0x394   : > { %v3419_v20 = vadd.f32 %v4640_v3, %v6344_v49  ;;  %v4646_v26 = vadd.f32 %v6322_v14, %v4537_v60  ;;  %v3346_v58 = vpop.f32.mrb[67].mxu1 }
 0x395   : > { %v3417_v32 = vadd.f32 %v4643_v29, %v6344_v49  ;;  %v4649_v36 = vadd.f32 %v6314_v1, %v3346_v58  ;;  %v3439_v1 = vld [vmem:[%s5522_s1 + $0x50] sm:$0xff] }
 0x396   : > { %v3451_v13 = vadd.f32 %v3435_v47, %v3419_v20  ;;  %v3420_v43 = vadd.f32 %v4646_v26, %v6344_v49 }
 0x397   : > { %v3449_v7 = vadd.f32 %v3433_v4, %v3417_v32  ;;  %v3418_v51 = vadd.f32 %v4649_v36, %v6344_v49 }
 0x398   : > { %3467 = vst [vmem:[%s6360_s13 + $0x30] sm:$0xff] %v3451_v13  ;;  %v3452_v45 = vadd.f32 %v3436_v57, %v3420_v43 }
 0x399   : > { %3465 = vst [vmem:[%s6360_s13 + $0x20] sm:$0xff] %v3449_v7  ;;  %v3450_v14 = vadd.f32 %v3434_v54, %v3418_v51  ;;  %v4540_v44 = vpop.f32.mrb[68].mxu1 }
 0x39a   : > { %3468 = vst [vmem:[%s6360_s13 + $0x38] sm:$0xff] %v3452_v45  ;;  %v4652_v62 = vadd.f32 %v6328_v10, %v4540_v44  ;;  %v3359_v9 = vpop.f32.mrb[69].mxu1  ;;  %v3440_v10 = vld [vmem:[%s5522_s1 + $0x58] sm:$0xff] }
 0x39b   : > { %3466 = vst [vmem:[%s6360_s13 + $0x28] sm:$0xff] %v3450_v14  ;;  %v4655_v55 = vadd.f32 %v6324_v17, %v3359_v9  ;;  %v4541_v28 = vpop.f32.mrb[70].mxu1  ;;  %v3438_v17 = vld [vmem:[%s5522_s1 + $0x48] sm:$0xff] }
 0x39c   : > { %v3423_v23 = vadd.f32 %v4652_v62, %v6344_v49  ;;  %v4658_v31 = vadd.f32 %v6330_v24, %v4541_v28  ;;  %v3362_v35 = vpop.f32.mrb[71].mxu1 }
 0x39d   : > { %v3421_v0 = vadd.f32 %v4655_v55, %v6344_v49  ;;  %v4661_v11 = vadd.f32 %v6326_v5, %v3362_v35 }
 0x39e   : > { %v3455_v21 = vadd.f32 %v3439_v1, %v3423_v23  ;;  %v3424_v52 = vadd.f32 %v4658_v31, %v6344_v49 }
 0x39f   : > { %v3453_v61 = vadd.f32 %v3437_v41, %v3421_v0  ;;  %v3422_v40 = vadd.f32 %v4661_v11, %v6344_v49 }
 0x3a0   : > { %3471 = vst [vmem:[%s6360_s13 + $0x50] sm:$0xff] %v3455_v21  ;;  %v3456_v24 = vadd.f32 %v3440_v10, %v3424_v52 }
 0x3a1   : > { %3469 = vst [vmem:[%s6360_s13 + $0x40] sm:$0xff] %v3453_v61  ;;  %v3454_v59 = vadd.f32 %v3438_v17, %v3422_v40  ;;  %v4544_v16 = vpop.f32.mrb[72].mxu1 }
 0x3a2   : > { %3472 = vst [vmem:[%s6360_s13 + $0x58] sm:$0xff] %v3456_v24  ;;  %v4664_v5 = vadd.f32 %v6336_v34, %v4544_v16  ;;  %v3375_v53 = vpop.f32.mrb[73].mxu1  ;;  %v3444_v34 = vld [vmem:[%s5522_s1 + $0x78] sm:$0xff]  ;;  %s6426_s1 = scalar_lea.sflag [#allocation6], %s283_s17 }
 0x3a3   : > { %3470 = vst [vmem:[%s6360_s13 + $0x48] sm:$0xff] %v3454_v59  ;;  %v4667_v30 = vadd.f32 %v6332_v18, %v3375_v53  ;;  %v4545_v12 = vpop.f32.mrb[74].mxu1 }
 0x3a4   : > { %v3427_v15 = vadd.f32 %v4664_v5, %v6344_v49  ;;  %v4670_v25 = vadd.f32 %v6339_v56, %v4545_v12  ;;  %v3378_v27 = vpop.f32.mrb[75].mxu1 }
 0x3a5   : > { %v3425_v42 = vadd.f32 %v4667_v30, %v6344_v49  ;;  %v4673_v8 = vadd.f32 %v6334_v63, %v3378_v27 }
 0x3a6   : > { %v3459_v18 = vadd.f32 %v3443_v48, %v3427_v15  ;;  %v3428_v38 = vadd.f32 %v4670_v25, %v6344_v49 }
 0x3a7   : > { %v3457_v50 = vadd.f32 %v3441_v37, %v3425_v42  ;;  %v3426_v56 = vadd.f32 %v4673_v8, %v6344_v49 }
 0x3a8   : > { %3475 = vst [vmem:[%s6360_s13 + $0x70] sm:$0xff] %v3459_v18  ;;  %v3460_v6 = vadd.f32 %v3444_v34, %v3428_v38 }
 0x3a9   : > { %3473 = vst [vmem:[%s6360_s13 + $0x60] sm:$0xff] %v3457_v50  ;;  %v3458_v63 = vadd.f32 %v3442_v2, %v3426_v56 }
 0x3aa   : > { %3476 = vst [vmem:[%s6360_s13 + $0x78] sm:$0xff] %v3460_v6 }
 0x3ab   : > { %3474 = vst [vmem:[%s6360_s13 + $0x68] sm:$0xff] %v3458_v63 }
 0x3ac   : > { %5098 = shalt.err (!%p5095_p0)
}
 0x3ad   : > { %s5099_s17 = scalar_lea.hbm %s6417_s5, 2048  ;;  %s5103_s13 = scalar_lea.hbm %s6535_s8, 8192 }
 0x3ae   : > { %p5100_p4 = scmp.ne.s32.totalorder %s6417_s5, %s5099_s17  ;;  %p5104_p13 = scmp.lt.u32.totalorder %s6417_s5, %s6535_s8 }
 0x3af   : > { %p5105_p9 = scmp.lt.u32.totalorder %s5103_s13, %s5099_s17  ;;  %p5107_p7 = scmp.lt.u32.totalorder %s5099_s17, %s6417_s5 }
 0x3b0   : > { %p5101_p1 = pnand %p5100_p4, %p6536_p5 }
 0x3b1   : > { %p5106_p11 = por %p5105_p9, %p5104_p13 }
 0x3b2   : > { %p5102_p3 = pneg %p5101_p1 }
 0x3b3   : > { %p5108_p8 = por %p5107_p7, %p5106_p11 }
 0x3b5   : > { %p5109_p12 = pnand %p5108_p8, %p5102_p3 }
 0x3b7   : > { %5112 = shalt.err (!%p5109_p12)
}
 0x3b8   : > { %s5221_s9 = smov 128   ;;  %s5222_s24 = smov 8  }
 0x3b9   : > { %4736 = dma.vmem_to_hbm [thread:$0]  (%p6536_p5), %s6419_s25, 2048, %s6417_s5, %s6426_s1, %s5221_s9, %s5221_s9, %s5222_s24  }
 0x3ba PF: > { %s6537_s21 = sld [smem:[#allocation14_spill]]  ;;  %s6538_s30 = sld [smem:[#allocation17_spill]] }
 0x3bb   : > { %p4758_p2 = scmp.ge.s32.totalorder %s5211_s28, 2 }
 0x3c0   : > { %s3509_s29 = sand.u32 1, %s6537_s21   ;;  %p6539_p6 = scmp.ne.s32.totalorder %s6538_s30, 0 }
 0x3c1   : > { %s3510_s6 = scalar_lea.sflag [#allocation6], %s3509_s29 }
 0x3c2   : > { %p4750_p10 = pnand %p4758_p2, %p6539_p6 }
 0x3c4   : > { %5166 = dma.done.wait (!%p4750_p10), %s3510_s6, 2048  }
 0x3c5   : > { %5168 = vsyncadd (!%p4750_p10), %s3510_s6, 4294965248  ;;  %s22_s28 = sadd.s32 1, %s5211_s28   ;;  %s6540_s25 = smov %s5423_s18 }
 0x3c6   : > { %p19_p0 = scmp.ge.s32.totalorder %s22_s28, 6   ;;  %s6541_s24 = sld [smem:[#allocation15_spill]] }
 0x3c7   : > { %s6542_s26 = sld [smem:[#allocation18_spill]]  ;;  %s6543_s18 = smov %s5175_s19 }
 0x3c8   : > { %s6544_s19 = smov %s5179_s20  ;;  %s6545_s20 = smov %s5428_s3 }
 0x3c9   : > { %s6546_s21 = smov %s5187_s22  ;;  %s6547_s22 = smov %s5191_s23 }
 0x3ca   : > { %s6548_s23 = smov %s6540_s25  ;;  %s6549_s25 = smov %s5207_s27 }
 0x3cb   : > { %s6550_s27 = smov %s6556_s7  ;;  %21 = sbr.rel (!%p19_p0) target bundleno = 14 (0xe), region = 102 }
 0x3d2   :  { %3515 = vsyncpa [#allocation5], 1 }
 0x3d3   :  { %3517 = vsyncpa [#allocation5 + $0x1], 1 }
 0x3d4   :  { %3518 = vsyncpa [#allocation8], 1 }
 0x3d5   :  { %3519 = vsyncpa [#allocation6], 1 }
 0x3d6   :  { %3521 = vsyncpa [#allocation6 + $0x1], 1 }

</bundles_post_ra>
